<compile_context>
chip_gen: v6e
topology: v6e:2x2x1
jax: 0.10.0
libtpu: 0.0.40
codegen_flags: <defaults>
</compile_context>

<pallas_src>
import functools

import jax
import jax.numpy as jnp
import numpy as np
from jax.experimental import pallas as pl
from jax.experimental.pallas import tpu as pltpu  # noqa: F401  (TPU backend)


# ----------------------------------------------------------------------------
# Fused 2-layer LSTM + Linear kernel (single invocation, time loop unrolled).
# ----------------------------------------------------------------------------
def _lstm2_fused_kernel(x_ref, h0_init_ref, c0_init_ref,
                        wih0_ref, w0f_ref, b0_ref,
                        w1bot_ref, b1_ref, wlin_ref, blin_ref,
                        pre_ref, hn_ref, cn_ref, *, B, T, H):
    """x_ref: (T*B, E) time-major flattened inputs.
    h0_init/c0_init: (2, B, H) per-layer initial states.
    wih0:  (E, 4H)  layer-0 input weights, transposed, g-cols pre-scaled x2.
    w0f:   (H, 8H)  [W_hh0.T | W_ih1.T] wavefront block, g-cols pre-scaled x2.
    w1bot: (H, 4H)  W_hh1.T, g-cols pre-scaled x2.
    b0/b1: (1, 4H)  summed ih+hh biases, g-part pre-scaled x2.
    wlin:  (H, W), blin: (1, W) final Linear.
    pre:   (T*B, W) time-major logits.
    hn/cn: (2, B, H) final states.  Gate order is PyTorch's i, f, g, o.
    """
    FH = 4 * H

    # Hoisted layer-0 input projection: one matmul covering every timestep,
    # off the recurrence critical path (layer-0 bias folded in).
    xg0 = (jnp.dot(x_ref[...], wih0_ref[...],
                   preferred_element_type=jnp.float32) + b0_ref[...])  # (T*B, 4H)

    w0f = w0f_ref[...]                                  # (H, 8H)
    w1b = w1bot_ref[...]                                # (H, 4H)
    b1_b = jnp.broadcast_to(b1_ref[...], (B, FH))       # hoisted bias broadcast

    def activate(gates, c_prev):
        # One full-width sigmoid; tanh(g) recovered as 2*sigmoid(2g)-1 (the 2x
        # lives in the pre-scaled g-gate weight/bias columns).
        sig = jax.nn.sigmoid(gates)
        i = sig[:, 0 * H:1 * H]
        f = sig[:, 1 * H:2 * H]
        g = 2.0 * sig[:, 2 * H:3 * H] - 1.0
        o = sig[:, 3 * H:4 * H]
        c_new = f * c_prev + i * g
        h_new = o * jnp.tanh(c_new)
        return h_new, c_new

    h0 = h0_init_ref[0]
    c0 = c0_init_ref[0]
    h1 = h0_init_ref[1]
    c1 = c0_init_ref[1]

    # Wavefront prologue: recurrent part of gates0(t=0) and h1's contribution
    # to gates1(t=0).
    rec0 = jnp.dot(h0, w0f[:, :FH], preferred_element_type=jnp.float32)  # (B, 4H)
    h1c = jnp.dot(h1, w1b, preferred_element_type=jnp.float32)           # (B, 4H)

    h1_steps = []
    for t in range(T):  # T is small & static: full unroll, LLO schedules across steps.
        # Layer 0: recurrent term was produced by the previous wavefront matmul.
        h0, c0 = activate(xg0[t * B:(t + 1) * B, :] + rec0, c0)

        # One fused MXU issue: cols [0,4H) = h0(t) @ W_hh0 (recurrent gates for
        # t+1), cols [4H,8H) = h0(t) @ W_ih1.T (layer-1's h0 part at t).  The
        # split point is a vreg (128-lane) boundary.
        fused = jnp.dot(h0, w0f, preferred_element_type=jnp.float32)     # (B, 8H)
        rec0 = fused[:, :FH]
        h1, c1 = activate(fused[:, FH:] + h1c + b1_b, c1)
        h1_steps.append(h1)

        if t + 1 < T:
            # Off the layer-0 critical path: h1(t)'s contribution to gates1(t+1).
            h1c = jnp.dot(h1, w1b, preferred_element_type=jnp.float32)

    # Final states: written once, after the loop (not per timestep).
    hn_ref[0] = h0
    hn_ref[1] = h1
    cn_ref[0] = c0
    cn_ref[1] = c1

    # Hoisted final Linear: single (T*B, H) @ (H, W) matmul + one dense store
    # (replaces T tiny matmuls and T masked partial stores in the loop).
    hidden = jnp.concatenate(h1_steps, axis=0)                           # (T*B, H)
    pre_ref[...] = (jnp.dot(hidden, wlin_ref[...],
                            preferred_element_type=jnp.float32) + blin_ref[...])


def lstm2_linear_forward(x_tm, h0_init, c0_init,
                         wih0_t, w0f, b0, w1_bot, b1, wlin_t, blin, *, B, T):
    """x_tm: (T*B, E). Returns pre (T*B, W) time-major, h_n/c_n (2, B, H)."""
    H = w1_bot.shape[0]
    W = wlin_t.shape[-1]
    kernel = functools.partial(_lstm2_fused_kernel, B=B, T=T, H=H)
    # No grid: inputs, weights and outputs are all VMEM-resident (tiny sizes).
    # TODO(synk): if B grows (>=16) add a "parallel" batch grid axis (v7x 2nd
    # TC); if T grows beyond a few dozen, switch to a chunked grid over T.
    return pl.pallas_call(
        kernel,
        out_shape=(
            jax.ShapeDtypeStruct((T * B, W), jnp.float32),
            jax.ShapeDtypeStruct((2, B, H), jnp.float32),
            jax.ShapeDtypeStruct((2, B, H), jnp.float32),
        ),
    )(x_tm, h0_init, c0_init, wih0_t, w0f, b0, w1_bot, b1, wlin_t, blin)


def _scale_g_cols(m, H):
    """Double the g-gate columns (PyTorch gate order i,f,g,o) so that the
    kernel can evaluate tanh(z) as 2*sigmoid(2z) - 1 with no extra scaling."""
    return m.at[..., 2 * H:3 * H].multiply(2.0)


# ----------------------------------------------------------------------------
# Module wrapper mirroring the PyTorch LSTM module's forward().
# ----------------------------------------------------------------------------
class LSTMPallas:
    def __init__(self, embedding_num, hidden_num, word_size, key):
        self.embedding_num = embedding_num
        self.hidden_num = hidden_num
        self.word_size = word_size
        H, E, Wsz = hidden_num, embedding_num, word_size
        k = 1.0 / np.sqrt(H)
        keys = jax.random.split(key, 10)
        u = lambda kk, shape: jax.random.uniform(kk, shape, jnp.float32, -k, k)
        # PyTorch parameter shapes (layer 0 and layer 1), gate order i,f,g,o.
        self.w_ih0 = u(keys[0], (4 * H, E))
        self.w_hh0 = u(keys[1], (4 * H, H))
        self.b_ih0 = u(keys[2], (4 * H,))
        self.b_hh0 = u(keys[3], (4 * H,))
        self.w_ih1 = u(keys[4], (4 * H, H))
        self.w_hh1 = u(keys[5], (4 * H, H))
        self.b_ih1 = u(keys[6], (4 * H,))
        self.b_hh1 = u(keys[7], (4 * H,))
        kl = 1.0 / np.sqrt(H)
        self.w_lin = jax.random.uniform(keys[8], (Wsz, H), jnp.float32, -kl, kl)
        self.b_lin = jax.random.uniform(keys[9], (Wsz,), jnp.float32, -kl, kl)

        # Kernel-layout parameters, packed once (g-gate columns pre-scaled x2
        # for the 2*sigmoid(2x)-1 tanh identity).
        self._wih0_t = _scale_g_cols(self.w_ih0.T, H)                      # (E, 4H)
        whh0_t = _scale_g_cols(self.w_hh0.T, H)                            # (H, 4H)
        w1_top = _scale_g_cols(self.w_ih1.T, H)                            # (H, 4H)
        self._w0f = jnp.concatenate([whh0_t, w1_top], axis=1)              # (H, 8H)
        self._b0 = _scale_g_cols((self.b_ih0 + self.b_hh0).reshape(1, -1), H)
        self._w1_bot = _scale_g_cols(self.w_hh1.T, H)                      # (H, 4H)
        self._b1 = _scale_g_cols((self.b_ih1 + self.b_hh1).reshape(1, -1), H)
        self._wlin_t = self.w_lin.T                                        # (H, W)
        self._blin = self.b_lin.reshape(1, -1)                             # (1, W)

    def __call__(self, xs_embedding, h_0=None, c_0=None):
        B, T, E = xs_embedding.shape
        H = self.hidden_num
        if h_0 is None or c_0 is None:
            h_0 = jnp.zeros((2, B, H), jnp.float32)
            c_0 = jnp.zeros((2, B, H), jnp.float32)
        # Cheap XLA transpose+reshape so each timestep is a contiguous
        # sublane slice inside the kernel.
        x_tm = jnp.transpose(xs_embedding, (1, 0, 2)).reshape(T * B, E)
        x_tm = x_tm.astype(jnp.float32)

        pre_tm, h_n, c_n = lstm2_linear_forward(
            x_tm, jnp.asarray(h_0, jnp.float32), jnp.asarray(c_0, jnp.float32),
            self._wih0_t, self._w0f, self._b0, self._w1_bot, self._b1,
            self._wlin_t, self._blin, B=B, T=T)

        # nn.Dropout(0.3) in eval mode is identity.
        # TODO(synk): training-mode dropout (p=0.3, between LSTM layers and
        # post-LSTM) would need pltpu.prng_random_bits for parity.
        # Time-major -> batch-major reorder in XLA, then nn.Flatten(0, 1).
        pre = (pre_tm.reshape(T, B, self.word_size)
               .transpose(1, 0, 2)
               .reshape(B * T, self.word_size))
        return pre, (h_n, c_n)


# ----------------------------------------------------------------------------
# Pure-JAX reference for verification (uses the original, unscaled weights).
# ----------------------------------------------------------------------------
def reference_forward(model, x, h_0=None, c_0=None):
    B, T, E = x.shape
    H = model.hidden_num
    if h_0 is None or c_0 is None:
        h_0 = jnp.zeros((2, B, H), jnp.float32)
        c_0 = jnp.zeros((2, B, H), jnp.float32)

    def cell(inp, h, c, wih, whh, bih, bhh):
        gates = inp @ wih.T + bih + h @ whh.T + bhh
        i, f, g, o = jnp.split(gates, 4, axis=-1)
        c_new = jax.nn.sigmoid(f) * c + jax.nn.sigmoid(i) * jnp.tanh(g)
        h_new = jax.nn.sigmoid(o) * jnp.tanh(c_new)
        return h_new, c_new

    h0, c0 = h_0[0], c_0[0]
    h1, c1 = h_0[1], c_0[1]
    outs = []
    for t in range(T):
        h0, c0 = cell(x[:, t, :], h0, c0, model.w_ih0, model.w_hh0,
                      model.b_ih0, model.b_hh0)
        h1, c1 = cell(h0, h1, c1, model.w_ih1, model.w_hh1,
                      model.b_ih1, model.b_hh1)
        outs.append(h1)
    hidden = jnp.stack(outs, axis=1)                            # (B, T, H)
    flatten = hidden.reshape(B * T, H)
    pre = flatten @ model.w_lin.T + model.b_lin
    h_n = jnp.stack([h0, h1], axis=0)
    c_n = jnp.stack([c0, c1], axis=0)
    return pre, (h_n, c_n)


if __name__ == "__main__":
    B, T = 2, 8
    embedding_num, hidden_num, word_size = 32, 32, 64

    key = jax.random.PRNGKey(0)
    k_param, k_x, k_h, k_c = jax.random.split(key, 4)
    model = LSTMPallas(embedding_num, hidden_num, word_size, k_param)

    xs_embedding = jax.random.normal(k_x, (B, T, embedding_num), jnp.float32)

    # Default (zero) initial states, matching PyTorch's forward(h_0=None, c_0=None).
    pre, (h_n, c_n) = model(xs_embedding)
    jax.block_until_ready((pre, h_n, c_n))

    ref_pre, (ref_h, ref_c) = reference_forward(model, xs_embedding)
    np.testing.assert_allclose(np.asarray(pre), np.asarray(ref_pre),
                               rtol=1e-4, atol=2e-4)
    np.testing.assert_allclose(np.asarray(h_n), np.asarray(ref_h),
                               rtol=1e-4, atol=2e-4)
    np.testing.assert_allclose(np.asarray(c_n), np.asarray(ref_c),
                               rtol=1e-4, atol=2e-4)

    # Non-zero initial states are plumbed into the kernel as well.
    h0_init = 0.5 * jax.random.normal(k_h, (2, B, hidden_num), jnp.float32)
    c0_init = 0.5 * jax.random.normal(k_c, (2, B, hidden_num), jnp.float32)
    pre2, (h_n2, c_n2) = model(xs_embedding, h0_init, c0_init)
    jax.block_until_ready((pre2, h_n2, c_n2))
    ref_pre2, (ref_h2, ref_c2) = reference_forward(model, xs_embedding,
                                                   h0_init, c0_init)
    np.testing.assert_allclose(np.asarray(pre2), np.asarray(ref_pre2),
                               rtol=1e-4, atol=2e-4)
    np.testing.assert_allclose(np.asarray(h_n2), np.asarray(ref_h2),
                               rtol=1e-4, atol=2e-4)
    np.testing.assert_allclose(np.asarray(c_n2), np.asarray(ref_c2),
                               rtol=1e-4, atol=2e-4)

    assert pre.shape == (B * T, word_size)
    assert h_n.shape == (2, B, hidden_num) and c_n.shape == (2, B, hidden_num)

    print("KERNEL_OK")
</pallas_src>

<mosaic_0001>
module attributes {stable_mosaic.version = 11 : i64} {
  func.func @_lstm2_fused_kernel(%arg0: memref<16x32xf32, #tpu.memory_space<vmem>>, %arg1: memref<2x2x32xf32, #tpu.memory_space<vmem>>, %arg2: memref<2x2x32xf32, #tpu.memory_space<vmem>>, %arg3: memref<32x128xf32, #tpu.memory_space<vmem>>, %arg4: memref<32x256xf32, #tpu.memory_space<vmem>>, %arg5: memref<1x128xf32, #tpu.memory_space<vmem>>, %arg6: memref<32x128xf32, #tpu.memory_space<vmem>>, %arg7: memref<1x128xf32, #tpu.memory_space<vmem>>, %arg8: memref<32x64xf32, #tpu.memory_space<vmem>>, %arg9: memref<1x64xf32, #tpu.memory_space<vmem>>, %arg10: memref<16x64xf32, #tpu.memory_space<vmem>>, %arg11: memref<2x2x32xf32, #tpu.memory_space<vmem>>, %arg12: memref<2x2x32xf32, #tpu.memory_space<vmem>>) attributes {dimension_semantics = [], scalar_prefetch = 0 : i64, scratch_operands = 0 : i64, tpu.core_type = #tpu.core_type<tc>} {
    %c0 = arith.constant 0 : index
    %c0_0 = arith.constant 0 : index
    %0 = vector.load %arg0[%c0, %c0_0] : memref<16x32xf32, #tpu.memory_space<vmem>>, vector<16x32xf32>
    %c0_1 = arith.constant 0 : index
    %c0_2 = arith.constant 0 : index
    %1 = vector.load %arg3[%c0_1, %c0_2] : memref<32x128xf32, #tpu.memory_space<vmem>>, vector<32x128xf32>
    %cst = arith.constant dense<0.000000e+00> : vector<16x128xf32>
    %2 = tpu.matmul %0, %1, %cst {dimension_numbers = #tpu.dot_dimension_numbers<[1], [0], [0], [1], [0, 0, 1, 1], [], []>} : vector<16x32xf32>, vector<32x128xf32>, vector<16x128xf32> -> vector<16x128xf32>
    %c0_3 = arith.constant 0 : index
    %c0_4 = arith.constant 0 : index
    %3 = vector.load %arg5[%c0_3, %c0_4] : memref<1x128xf32, #tpu.memory_space<vmem>>, vector<1x128xf32>
    %4 = vector.broadcast %3 : vector<1x128xf32> to vector<16x128xf32>
    %5 = arith.addf %2, %4 : vector<16x128xf32>
    %c0_5 = arith.constant 0 : index
    %c0_6 = arith.constant 0 : index
    %6 = vector.load %arg4[%c0_5, %c0_6] : memref<32x256xf32, #tpu.memory_space<vmem>>, vector<32x256xf32>
    %c0_7 = arith.constant 0 : index
    %c0_8 = arith.constant 0 : index
    %7 = vector.load %arg6[%c0_7, %c0_8] : memref<32x128xf32, #tpu.memory_space<vmem>>, vector<32x128xf32>
    %c0_9 = arith.constant 0 : index
    %c0_10 = arith.constant 0 : index
    %8 = vector.load %arg7[%c0_9, %c0_10] : memref<1x128xf32, #tpu.memory_space<vmem>>, vector<1x128xf32>
    %9 = vector.shape_cast %8 : vector<1x128xf32> to vector<1x128xf32>
    %10 = vector.broadcast %9 : vector<1x128xf32> to vector<2x128xf32>
    %c0_11 = arith.constant 0 : index
    %c0_12 = arith.constant 0 : index
    %c0_13 = arith.constant 0 : index
    %11 = vector.load %arg1[%c0_11, %c0_12, %c0_13] : memref<2x2x32xf32, #tpu.memory_space<vmem>>, vector<1x2x32xf32>
    %12 = vector.shape_cast %11 : vector<1x2x32xf32> to vector<2x32xf32>
    %c0_14 = arith.constant 0 : index
    %c0_15 = arith.constant 0 : index
    %c0_16 = arith.constant 0 : index
    %13 = vector.load %arg2[%c0_14, %c0_15, %c0_16] : memref<2x2x32xf32, #tpu.memory_space<vmem>>, vector<1x2x32xf32>
    %14 = vector.shape_cast %13 : vector<1x2x32xf32> to vector<2x32xf32>
    %c1 = arith.constant 1 : index
    %c0_17 = arith.constant 0 : index
    %c0_18 = arith.constant 0 : index
    %15 = vector.load %arg1[%c1, %c0_17, %c0_18] : memref<2x2x32xf32, #tpu.memory_space<vmem>>, vector<1x2x32xf32>
    %16 = vector.shape_cast %15 : vector<1x2x32xf32> to vector<2x32xf32>
    %c1_19 = arith.constant 1 : index
    %c0_20 = arith.constant 0 : index
    %c0_21 = arith.constant 0 : index
    %17 = vector.load %arg2[%c1_19, %c0_20, %c0_21] : memref<2x2x32xf32, #tpu.memory_space<vmem>>, vector<1x2x32xf32>
    %18 = vector.shape_cast %17 : vector<1x2x32xf32> to vector<2x32xf32>
    %19 = vector.extract_strided_slice %6 {offsets = [0, 0], sizes = [32, 128], strides = [1, 1]} : vector<32x256xf32> to vector<32x128xf32>
    %cst_22 = arith.constant dense<0.000000e+00> : vector<2x128xf32>
    %20 = tpu.matmul %12, %19, %cst_22 {dimension_numbers = #tpu.dot_dimension_numbers<[1], [0], [0], [1], [0, 0, 1, 1], [], []>} : vector<2x32xf32>, vector<32x128xf32>, vector<2x128xf32> -> vector<2x128xf32>
    %cst_23 = arith.constant dense<0.000000e+00> : vector<2x128xf32>
    %21 = tpu.matmul %16, %7, %cst_23 {dimension_numbers = #tpu.dot_dimension_numbers<[1], [0], [0], [1], [0, 0, 1, 1], [], []>} : vector<2x32xf32>, vector<32x128xf32>, vector<2x128xf32> -> vector<2x128xf32>
    %22 = vector.extract_strided_slice %5 {offsets = [0, 0], sizes = [2, 128], strides = [1, 1]} : vector<16x128xf32> to vector<2x128xf32>
    %23 = arith.addf %22, %20 : vector<2x128xf32>
    %24 = arith.negf %23 : vector<2x128xf32>
    %25 = math.exp %24 : vector<2x128xf32>
    %cst_24 = arith.constant 1.000000e+00 : f32
    %26 = vector.broadcast %cst_24 : f32 to vector<2x128xf32>
    %27 = arith.addf %26, %25 : vector<2x128xf32>
    %28 = arith.divf %26, %27 : vector<2x128xf32>
    %29 = vector.extract_strided_slice %28 {offsets = [0, 0], sizes = [2, 32], strides = [1, 1]} : vector<2x128xf32> to vector<2x32xf32>
    %30 = vector.extract_strided_slice %28 {offsets = [0, 32], sizes = [2, 32], strides = [1, 1]} : vector<2x128xf32> to vector<2x32xf32>
    %31 = vector.extract_strided_slice %28 {offsets = [0, 64], sizes = [2, 32], strides = [1, 1]} : vector<2x128xf32> to vector<2x32xf32>
    %cst_25 = arith.constant 2.000000e+00 : f32
    %32 = vector.broadcast %cst_25 : f32 to vector<2x32xf32>
    %33 = arith.mulf %32, %31 : vector<2x32xf32>
    %cst_26 = arith.constant 1.000000e+00 : f32
    %34 = vector.broadcast %cst_26 : f32 to vector<2x32xf32>
    %35 = arith.subf %33, %34 : vector<2x32xf32>
    %36 = vector.extract_strided_slice %28 {offsets = [0, 96], sizes = [2, 32], strides = [1, 1]} : vector<2x128xf32> to vector<2x32xf32>
    %37 = arith.mulf %30, %14 : vector<2x32xf32>
    %38 = arith.mulf %29, %35 : vector<2x32xf32>
    %39 = arith.addf %37, %38 : vector<2x32xf32>
    %40 = math.tanh %39 : vector<2x32xf32>
    %41 = arith.mulf %36, %40 : vector<2x32xf32>
    %cst_27 = arith.constant dense<0.000000e+00> : vector<2x256xf32>
    %42 = tpu.matmul %41, %6, %cst_27 {dimension_numbers = #tpu.dot_dimension_numbers<[1], [0], [0], [1], [0, 0, 1, 1], [], []>} : vector<2x32xf32>, vector<32x256xf32>, vector<2x256xf32> -> vector<2x256xf32>
    %43 = vector.extract_strided_slice %42 {offsets = [0, 0], sizes = [2, 128], strides = [1, 1]} : vector<2x256xf32> to vector<2x128xf32>
    %44 = vector.extract_strided_slice %42 {offsets = [0, 128], sizes = [2, 128], strides = [1, 1]} : vector<2x256xf32> to vector<2x128xf32>
    %45 = arith.addf %44, %21 : vector<2x128xf32>
    %46 = arith.addf %45, %10 : vector<2x128xf32>
    %47 = arith.negf %46 : vector<2x128xf32>
    %48 = math.exp %47 : vector<2x128xf32>
    %cst_28 = arith.constant 1.000000e+00 : f32
    %49 = vector.broadcast %cst_28 : f32 to vector<2x128xf32>
    %50 = arith.addf %49, %48 : vector<2x128xf32>
    %51 = arith.divf %49, %50 : vector<2x128xf32>
    %52 = vector.extract_strided_slice %51 {offsets = [0, 0], sizes = [2, 32], strides = [1, 1]} : vector<2x128xf32> to vector<2x32xf32>
    %53 = vector.extract_strided_slice %51 {offsets = [0, 32], sizes = [2, 32], strides = [1, 1]} : vector<2x128xf32> to vector<2x32xf32>
    %54 = vector.extract_strided_slice %51 {offsets = [0, 64], sizes = [2, 32], strides = [1, 1]} : vector<2x128xf32> to vector<2x32xf32>
    %cst_29 = arith.constant 2.000000e+00 : f32
    %55 = vector.broadcast %cst_29 : f32 to vector<2x32xf32>
    %56 = arith.mulf %55, %54 : vector<2x32xf32>
    %cst_30 = arith.constant 1.000000e+00 : f32
    %57 = vector.broadcast %cst_30 : f32 to vector<2x32xf32>
    %58 = arith.subf %56, %57 : vector<2x32xf32>
    %59 = vector.extract_strided_slice %51 {offsets = [0, 96], sizes = [2, 32], strides = [1, 1]} : vector<2x128xf32> to vector<2x32xf32>
    %60 = arith.mulf %53, %18 : vector<2x32xf32>
    %61 = arith.mulf %52, %58 : vector<2x32xf32>
    %62 = arith.addf %60, %61 : vector<2x32xf32>
    %63 = math.tanh %62 : vector<2x32xf32>
    %64 = arith.mulf %59, %63 : vector<2x32xf32>
    %cst_31 = arith.constant dense<0.000000e+00> : vector<2x128xf32>
    %65 = tpu.matmul %64, %7, %cst_31 {dimension_numbers = #tpu.dot_dimension_numbers<[1], [0], [0], [1], [0, 0, 1, 1], [], []>} : vector<2x32xf32>, vector<32x128xf32>, vector<2x128xf32> -> vector<2x128xf32>
    %66 = vector.extract_strided_slice %5 {offsets = [2, 0], sizes = [2, 128], strides = [1, 1]} : vector<16x128xf32> to vector<2x128xf32>
    %67 = arith.addf %66, %43 : vector<2x128xf32>
    %68 = arith.negf %67 : vector<2x128xf32>
    %69 = math.exp %68 : vector<2x128xf32>
    %cst_32 = arith.constant 1.000000e+00 : f32
    %70 = vector.broadcast %cst_32 : f32 to vector<2x128xf32>
    %71 = arith.addf %70, %69 : vector<2x128xf32>
    %72 = arith.divf %70, %71 : vector<2x128xf32>
    %73 = vector.extract_strided_slice %72 {offsets = [0, 0], sizes = [2, 32], strides = [1, 1]} : vector<2x128xf32> to vector<2x32xf32>
    %74 = vector.extract_strided_slice %72 {offsets = [0, 32], sizes = [2, 32], strides = [1, 1]} : vector<2x128xf32> to vector<2x32xf32>
    %75 = vector.extract_strided_slice %72 {offsets = [0, 64], sizes = [2, 32], strides = [1, 1]} : vector<2x128xf32> to vector<2x32xf32>
    %cst_33 = arith.constant 2.000000e+00 : f32
    %76 = vector.broadcast %cst_33 : f32 to vector<2x32xf32>
    %77 = arith.mulf %76, %75 : vector<2x32xf32>
    %cst_34 = arith.constant 1.000000e+00 : f32
    %78 = vector.broadcast %cst_34 : f32 to vector<2x32xf32>
    %79 = arith.subf %77, %78 : vector<2x32xf32>
    %80 = vector.extract_strided_slice %72 {offsets = [0, 96], sizes = [2, 32], strides = [1, 1]} : vector<2x128xf32> to vector<2x32xf32>
    %81 = arith.mulf %74, %39 : vector<2x32xf32>
    %82 = arith.mulf %73, %79 : vector<2x32xf32>
    %83 = arith.addf %81, %82 : vector<2x32xf32>
    %84 = math.tanh %83 : vector<2x32xf32>
    %85 = arith.mulf %80, %84 : vector<2x32xf32>
    %cst_35 = arith.constant dense<0.000000e+00> : vector<2x256xf32>
    %86 = tpu.matmul %85, %6, %cst_35 {dimension_numbers = #tpu.dot_dimension_numbers<[1], [0], [0], [1], [0, 0, 1, 1], [], []>} : vector<2x32xf32>, vector<32x256xf32>, vector<2x256xf32> -> vector<2x256xf32>
    %87 = vector.extract_strided_slice %86 {offsets = [0, 0], sizes = [2, 128], strides = [1, 1]} : vector<2x256xf32> to vector<2x128xf32>
    %88 = vector.extract_strided_slice %86 {offsets = [0, 128], sizes = [2, 128], strides = [1, 1]} : vector<2x256xf32> to vector<2x128xf32>
    %89 = arith.addf %88, %65 : vector<2x128xf32>
    %90 = arith.addf %89, %10 : vector<2x128xf32>
    %91 = arith.negf %90 : vector<2x128xf32>
    %92 = math.exp %91 : vector<2x128xf32>
    %cst_36 = arith.constant 1.000000e+00 : f32
    %93 = vector.broadcast %cst_36 : f32 to vector<2x128xf32>
    %94 = arith.addf %93, %92 : vector<2x128xf32>
    %95 = arith.divf %93, %94 : vector<2x128xf32>
    %96 = vector.extract_strided_slice %95 {offsets = [0, 0], sizes = [2, 32], strides = [1, 1]} : vector<2x128xf32> to vector<2x32xf32>
    %97 = vector.extract_strided_slice %95 {offsets = [0, 32], sizes = [2, 32], strides = [1, 1]} : vector<2x128xf32> to vector<2x32xf32>
    %98 = vector.extract_strided_slice %95 {offsets = [0, 64], sizes = [2, 32], strides = [1, 1]} : vector<2x128xf32> to vector<2x32xf32>
    %cst_37 = arith.constant 2.000000e+00 : f32
    %99 = vector.broadcast %cst_37 : f32 to vector<2x32xf32>
    %100 = arith.mulf %99, %98 : vector<2x32xf32>
    %cst_38 = arith.constant 1.000000e+00 : f32
    %101 = vector.broadcast %cst_38 : f32 to vector<2x32xf32>
    %102 = arith.subf %100, %101 : vector<2x32xf32>
    %103 = vector.extract_strided_slice %95 {offsets = [0, 96], sizes = [2, 32], strides = [1, 1]} : vector<2x128xf32> to vector<2x32xf32>
    %104 = arith.mulf %97, %62 : vector<2x32xf32>
    %105 = arith.mulf %96, %102 : vector<2x32xf32>
    %106 = arith.addf %104, %105 : vector<2x32xf32>
    %107 = math.tanh %106 : vector<2x32xf32>
    %108 = arith.mulf %103, %107 : vector<2x32xf32>
    %cst_39 = arith.constant dense<0.000000e+00> : vector<2x128xf32>
    %109 = tpu.matmul %108, %7, %cst_39 {dimension_numbers = #tpu.dot_dimension_numbers<[1], [0], [0], [1], [0, 0, 1, 1], [], []>} : vector<2x32xf32>, vector<32x128xf32>, vector<2x128xf32> -> vector<2x128xf32>
    %110 = vector.extract_strided_slice %5 {offsets = [4, 0], sizes = [2, 128], strides = [1, 1]} : vector<16x128xf32> to vector<2x128xf32>
    %111 = arith.addf %110, %87 : vector<2x128xf32>
    %112 = arith.negf %111 : vector<2x128xf32>
    %113 = math.exp %112 : vector<2x128xf32>
    %cst_40 = arith.constant 1.000000e+00 : f32
    %114 = vector.broadcast %cst_40 : f32 to vector<2x128xf32>
    %115 = arith.addf %114, %113 : vector<2x128xf32>
    %116 = arith.divf %114, %115 : vector<2x128xf32>
    %117 = vector.extract_strided_slice %116 {offsets = [0, 0], sizes = [2, 32], strides = [1, 1]} : vector<2x128xf32> to vector<2x32xf32>
    %118 = vector.extract_strided_slice %116 {offsets = [0, 32], sizes = [2, 32], strides = [1, 1]} : vector<2x128xf32> to vector<2x32xf32>
    %119 = vector.extract_strided_slice %116 {offsets = [0, 64], sizes = [2, 32], strides = [1, 1]} : vector<2x128xf32> to vector<2x32xf32>
    %cst_41 = arith.constant 2.000000e+00 : f32
    %120 = vector.broadcast %cst_41 : f32 to vector<2x32xf32>
    %121 = arith.mulf %120, %119 : vector<2x32xf32>
    %cst_42 = arith.constant 1.000000e+00 : f32
    %122 = vector.broadcast %cst_42 : f32 to vector<2x32xf32>
    %123 = arith.subf %121, %122 : vector<2x32xf32>
    %124 = vector.extract_strided_slice %116 {offsets = [0, 96], sizes = [2, 32], strides = [1, 1]} : vector<2x128xf32> to vector<2x32xf32>
    %125 = arith.mulf %118, %83 : vector<2x32xf32>
    %126 = arith.mulf %117, %123 : vector<2x32xf32>
    %127 = arith.addf %125, %126 : vector<2x32xf32>
    %128 = math.tanh %127 : vector<2x32xf32>
    %129 = arith.mulf %124, %128 : vector<2x32xf32>
    %cst_43 = arith.constant dense<0.000000e+00> : vector<2x256xf32>
    %130 = tpu.matmul %129, %6, %cst_43 {dimension_numbers = #tpu.dot_dimension_numbers<[1], [0], [0], [1], [0, 0, 1, 1], [], []>} : vector<2x32xf32>, vector<32x256xf32>, vector<2x256xf32> -> vector<2x256xf32>
    %131 = vector.extract_strided_slice %130 {offsets = [0, 0], sizes = [2, 128], strides = [1, 1]} : vector<2x256xf32> to vector<2x128xf32>
    %132 = vector.extract_strided_slice %130 {offsets = [0, 128], sizes = [2, 128], strides = [1, 1]} : vector<2x256xf32> to vector<2x128xf32>
    %133 = arith.addf %132, %109 : vector<2x128xf32>
    %134 = arith.addf %133, %10 : vector<2x128xf32>
    %135 = arith.negf %134 : vector<2x128xf32>
    %136 = math.exp %135 : vector<2x128xf32>
    %cst_44 = arith.constant 1.000000e+00 : f32
    %137 = vector.broadcast %cst_44 : f32 to vector<2x128xf32>
    %138 = arith.addf %137, %136 : vector<2x128xf32>
    %139 = arith.divf %137, %138 : vector<2x128xf32>
    %140 = vector.extract_strided_slice %139 {offsets = [0, 0], sizes = [2, 32], strides = [1, 1]} : vector<2x128xf32> to vector<2x32xf32>
    %141 = vector.extract_strided_slice %139 {offsets = [0, 32], sizes = [2, 32], strides = [1, 1]} : vector<2x128xf32> to vector<2x32xf32>
    %142 = vector.extract_strided_slice %139 {offsets = [0, 64], sizes = [2, 32], strides = [1, 1]} : vector<2x128xf32> to vector<2x32xf32>
    %cst_45 = arith.constant 2.000000e+00 : f32
    %143 = vector.broadcast %cst_45 : f32 to vector<2x32xf32>
    %144 = arith.mulf %143, %142 : vector<2x32xf32>
    %cst_46 = arith.constant 1.000000e+00 : f32
    %145 = vector.broadcast %cst_46 : f32 to vector<2x32xf32>
    %146 = arith.subf %144, %145 : vector<2x32xf32>
    %147 = vector.extract_strided_slice %139 {offsets = [0, 96], sizes = [2, 32], strides = [1, 1]} : vector<2x128xf32> to vector<2x32xf32>
    %148 = arith.mulf %141, %106 : vector<2x32xf32>
    %149 = arith.mulf %140, %146 : vector<2x32xf32>
    %150 = arith.addf %148, %149 : vector<2x32xf32>
    %151 = math.tanh %150 : vector<2x32xf32>
    %152 = arith.mulf %147, %151 : vector<2x32xf32>
    %cst_47 = arith.constant dense<0.000000e+00> : vector<2x128xf32>
    %153 = tpu.matmul %152, %7, %cst_47 {dimension_numbers = #tpu.dot_dimension_numbers<[1], [0], [0], [1], [0, 0, 1, 1], [], []>} : vector<2x32xf32>, vector<32x128xf32>, vector<2x128xf32> -> vector<2x128xf32>
    %154 = vector.extract_strided_slice %5 {offsets = [6, 0], sizes = [2, 128], strides = [1, 1]} : vector<16x128xf32> to vector<2x128xf32>
    %155 = arith.addf %154, %131 : vector<2x128xf32>
    %156 = arith.negf %155 : vector<2x128xf32>
    %157 = math.exp %156 : vector<2x128xf32>
    %cst_48 = arith.constant 1.000000e+00 : f32
    %158 = vector.broadcast %cst_48 : f32 to vector<2x128xf32>
    %159 = arith.addf %158, %157 : vector<2x128xf32>
    %160 = arith.divf %158, %159 : vector<2x128xf32>
    %161 = vector.extract_strided_slice %160 {offsets = [0, 0], sizes = [2, 32], strides = [1, 1]} : vector<2x128xf32> to vector<2x32xf32>
    %162 = vector.extract_strided_slice %160 {offsets = [0, 32], sizes = [2, 32], strides = [1, 1]} : vector<2x128xf32> to vector<2x32xf32>
    %163 = vector.extract_strided_slice %160 {offsets = [0, 64], sizes = [2, 32], strides = [1, 1]} : vector<2x128xf32> to vector<2x32xf32>
    %cst_49 = arith.constant 2.000000e+00 : f32
    %164 = vector.broadcast %cst_49 : f32 to vector<2x32xf32>
    %165 = arith.mulf %164, %163 : vector<2x32xf32>
    %cst_50 = arith.constant 1.000000e+00 : f32
    %166 = vector.broadcast %cst_50 : f32 to vector<2x32xf32>
    %167 = arith.subf %165, %166 : vector<2x32xf32>
    %168 = vector.extract_strided_slice %160 {offsets = [0, 96], sizes = [2, 32], strides = [1, 1]} : vector<2x128xf32> to vector<2x32xf32>
    %169 = arith.mulf %162, %127 : vector<2x32xf32>
    %170 = arith.mulf %161, %167 : vector<2x32xf32>
    %171 = arith.addf %169, %170 : vector<2x32xf32>
    %172 = math.tanh %171 : vector<2x32xf32>
    %173 = arith.mulf %168, %172 : vector<2x32xf32>
    %cst_51 = arith.constant dense<0.000000e+00> : vector<2x256xf32>
    %174 = tpu.matmul %173, %6, %cst_51 {dimension_numbers = #tpu.dot_dimension_numbers<[1], [0], [0], [1], [0, 0, 1, 1], [], []>} : vector<2x32xf32>, vector<32x256xf32>, vector<2x256xf32> -> vector<2x256xf32>
    %175 = vector.extract_strided_slice %174 {offsets = [0, 0], sizes = [2, 128], strides = [1, 1]} : vector<2x256xf32> to vector<2x128xf32>
    %176 = vector.extract_strided_slice %174 {offsets = [0, 128], sizes = [2, 128], strides = [1, 1]} : vector<2x256xf32> to vector<2x128xf32>
    %177 = arith.addf %176, %153 : vector<2x128xf32>
    %178 = arith.addf %177, %10 : vector<2x128xf32>
    %179 = arith.negf %178 : vector<2x128xf32>
    %180 = math.exp %179 : vector<2x128xf32>
    %cst_52 = arith.constant 1.000000e+00 : f32
    %181 = vector.broadcast %cst_52 : f32 to vector<2x128xf32>
    %182 = arith.addf %181, %180 : vector<2x128xf32>
    %183 = arith.divf %181, %182 : vector<2x128xf32>
    %184 = vector.extract_strided_slice %183 {offsets = [0, 0], sizes = [2, 32], strides = [1, 1]} : vector<2x128xf32> to vector<2x32xf32>
    %185 = vector.extract_strided_slice %183 {offsets = [0, 32], sizes = [2, 32], strides = [1, 1]} : vector<2x128xf32> to vector<2x32xf32>
    %186 = vector.extract_strided_slice %183 {offsets = [0, 64], sizes = [2, 32], strides = [1, 1]} : vector<2x128xf32> to vector<2x32xf32>
    %cst_53 = arith.constant 2.000000e+00 : f32
    %187 = vector.broadcast %cst_53 : f32 to vector<2x32xf32>
    %188 = arith.mulf %187, %186 : vector<2x32xf32>
    %cst_54 = arith.constant 1.000000e+00 : f32
    %189 = vector.broadcast %cst_54 : f32 to vector<2x32xf32>
    %190 = arith.subf %188, %189 : vector<2x32xf32>
    %191 = vector.extract_strided_slice %183 {offsets = [0, 96], sizes = [2, 32], strides = [1, 1]} : vector<2x128xf32> to vector<2x32xf32>
    %192 = arith.mulf %185, %150 : vector<2x32xf32>
    %193 = arith.mulf %184, %190 : vector<2x32xf32>
    %194 = arith.addf %192, %193 : vector<2x32xf32>
    %195 = math.tanh %194 : vector<2x32xf32>
    %196 = arith.mulf %191, %195 : vector<2x32xf32>
    %cst_55 = arith.constant dense<0.000000e+00> : vector<2x128xf32>
    %197 = tpu.matmul %196, %7, %cst_55 {dimension_numbers = #tpu.dot_dimension_numbers<[1], [0], [0], [1], [0, 0, 1, 1], [], []>} : vector<2x32xf32>, vector<32x128xf32>, vector<2x128xf32> -> vector<2x128xf32>
    %198 = vector.extract_strided_slice %5 {offsets = [8, 0], sizes = [2, 128], strides = [1, 1]} : vector<16x128xf32> to vector<2x128xf32>
    %199 = arith.addf %198, %175 : vector<2x128xf32>
    %200 = arith.negf %199 : vector<2x128xf32>
    %201 = math.exp %200 : vector<2x128xf32>
    %cst_56 = arith.constant 1.000000e+00 : f32
    %202 = vector.broadcast %cst_56 : f32 to vector<2x128xf32>
    %203 = arith.addf %202, %201 : vector<2x128xf32>
    %204 = arith.divf %202, %203 : vector<2x128xf32>
    %205 = vector.extract_strided_slice %204 {offsets = [0, 0], sizes = [2, 32], strides = [1, 1]} : vector<2x128xf32> to vector<2x32xf32>
    %206 = vector.extract_strided_slice %204 {offsets = [0, 32], sizes = [2, 32], strides = [1, 1]} : vector<2x128xf32> to vector<2x32xf32>
    %207 = vector.extract_strided_slice %204 {offsets = [0, 64], sizes = [2, 32], strides = [1, 1]} : vector<2x128xf32> to vector<2x32xf32>
    %cst_57 = arith.constant 2.000000e+00 : f32
    %208 = vector.broadcast %cst_57 : f32 to vector<2x32xf32>
    %209 = arith.mulf %208, %207 : vector<2x32xf32>
    %cst_58 = arith.constant 1.000000e+00 : f32
    %210 = vector.broadcast %cst_58 : f32 to vector<2x32xf32>
    %211 = arith.subf %209, %210 : vector<2x32xf32>
    %212 = vector.extract_strided_slice %204 {offsets = [0, 96], sizes = [2, 32], strides = [1, 1]} : vector<2x128xf32> to vector<2x32xf32>
    %213 = arith.mulf %206, %171 : vector<2x32xf32>
    %214 = arith.mulf %205, %211 : vector<2x32xf32>
    %215 = arith.addf %213, %214 : vector<2x32xf32>
    %216 = math.tanh %215 : vector<2x32xf32>
    %217 = arith.mulf %212, %216 : vector<2x32xf32>
    %cst_59 = arith.constant dense<0.000000e+00> : vector<2x256xf32>
    %218 = tpu.matmul %217, %6, %cst_59 {dimension_numbers = #tpu.dot_dimension_numbers<[1], [0], [0], [1], [0, 0, 1, 1], [], []>} : vector<2x32xf32>, vector<32x256xf32>, vector<2x256xf32> -> vector<2x256xf32>
    %219 = vector.extract_strided_slice %218 {offsets = [0, 0], sizes = [2, 128], strides = [1, 1]} : vector<2x256xf32> to vector<2x128xf32>
    %220 = vector.extract_strided_slice %218 {offsets = [0, 128], sizes = [2, 128], strides = [1, 1]} : vector<2x256xf32> to vector<2x128xf32>
    %221 = arith.addf %220, %197 : vector<2x128xf32>
    %222 = arith.addf %221, %10 : vector<2x128xf32>
    %223 = arith.negf %222 : vector<2x128xf32>
    %224 = math.exp %223 : vector<2x128xf32>
    %cst_60 = arith.constant 1.000000e+00 : f32
    %225 = vector.broadcast %cst_60 : f32 to vector<2x128xf32>
    %226 = arith.addf %225, %224 : vector<2x128xf32>
    %227 = arith.divf %225, %226 : vector<2x128xf32>
    %228 = vector.extract_strided_slice %227 {offsets = [0, 0], sizes = [2, 32], strides = [1, 1]} : vector<2x128xf32> to vector<2x32xf32>
    %229 = vector.extract_strided_slice %227 {offsets = [0, 32], sizes = [2, 32], strides = [1, 1]} : vector<2x128xf32> to vector<2x32xf32>
    %230 = vector.extract_strided_slice %227 {offsets = [0, 64], sizes = [2, 32], strides = [1, 1]} : vector<2x128xf32> to vector<2x32xf32>
    %cst_61 = arith.constant 2.000000e+00 : f32
    %231 = vector.broadcast %cst_61 : f32 to vector<2x32xf32>
    %232 = arith.mulf %231, %230 : vector<2x32xf32>
    %cst_62 = arith.constant 1.000000e+00 : f32
    %233 = vector.broadcast %cst_62 : f32 to vector<2x32xf32>
    %234 = arith.subf %232, %233 : vector<2x32xf32>
    %235 = vector.extract_strided_slice %227 {offsets = [0, 96], sizes = [2, 32], strides = [1, 1]} : vector<2x128xf32> to vector<2x32xf32>
    %236 = arith.mulf %229, %194 : vector<2x32xf32>
    %237 = arith.mulf %228, %234 : vector<2x32xf32>
    %238 = arith.addf %236, %237 : vector<2x32xf32>
    %239 = math.tanh %238 : vector<2x32xf32>
    %240 = arith.mulf %235, %239 : vector<2x32xf32>
    %cst_63 = arith.constant dense<0.000000e+00> : vector<2x128xf32>
    %241 = tpu.matmul %240, %7, %cst_63 {dimension_numbers = #tpu.dot_dimension_numbers<[1], [0], [0], [1], [0, 0, 1, 1], [], []>} : vector<2x32xf32>, vector<32x128xf32>, vector<2x128xf32> -> vector<2x128xf32>
    %242 = vector.extract_strided_slice %5 {offsets = [10, 0], sizes = [2, 128], strides = [1, 1]} : vector<16x128xf32> to vector<2x128xf32>
    %243 = arith.addf %242, %219 : vector<2x128xf32>
    %244 = arith.negf %243 : vector<2x128xf32>
    %245 = math.exp %244 : vector<2x128xf32>
    %cst_64 = arith.constant 1.000000e+00 : f32
    %246 = vector.broadcast %cst_64 : f32 to vector<2x128xf32>
    %247 = arith.addf %246, %245 : vector<2x128xf32>
    %248 = arith.divf %246, %247 : vector<2x128xf32>
    %249 = vector.extract_strided_slice %248 {offsets = [0, 0], sizes = [2, 32], strides = [1, 1]} : vector<2x128xf32> to vector<2x32xf32>
    %250 = vector.extract_strided_slice %248 {offsets = [0, 32], sizes = [2, 32], strides = [1, 1]} : vector<2x128xf32> to vector<2x32xf32>
    %251 = vector.extract_strided_slice %248 {offsets = [0, 64], sizes = [2, 32], strides = [1, 1]} : vector<2x128xf32> to vector<2x32xf32>
    %cst_65 = arith.constant 2.000000e+00 : f32
    %252 = vector.broadcast %cst_65 : f32 to vector<2x32xf32>
    %253 = arith.mulf %252, %251 : vector<2x32xf32>
    %cst_66 = arith.constant 1.000000e+00 : f32
    %254 = vector.broadcast %cst_66 : f32 to vector<2x32xf32>
    %255 = arith.subf %253, %254 : vector<2x32xf32>
    %256 = vector.extract_strided_slice %248 {offsets = [0, 96], sizes = [2, 32], strides = [1, 1]} : vector<2x128xf32> to vector<2x32xf32>
    %257 = arith.mulf %250, %215 : vector<2x32xf32>
    %258 = arith.mulf %249, %255 : vector<2x32xf32>
    %259 = arith.addf %257, %258 : vector<2x32xf32>
    %260 = math.tanh %259 : vector<2x32xf32>
    %261 = arith.mulf %256, %260 : vector<2x32xf32>
    %cst_67 = arith.constant dense<0.000000e+00> : vector<2x256xf32>
    %262 = tpu.matmul %261, %6, %cst_67 {dimension_numbers = #tpu.dot_dimension_numbers<[1], [0], [0], [1], [0, 0, 1, 1], [], []>} : vector<2x32xf32>, vector<32x256xf32>, vector<2x256xf32> -> vector<2x256xf32>
    %263 = vector.extract_strided_slice %262 {offsets = [0, 0], sizes = [2, 128], strides = [1, 1]} : vector<2x256xf32> to vector<2x128xf32>
    %264 = vector.extract_strided_slice %262 {offsets = [0, 128], sizes = [2, 128], strides = [1, 1]} : vector<2x256xf32> to vector<2x128xf32>
    %265 = arith.addf %264, %241 : vector<2x128xf32>
    %266 = arith.addf %265, %10 : vector<2x128xf32>
    %267 = arith.negf %266 : vector<2x128xf32>
    %268 = math.exp %267 : vector<2x128xf32>
    %cst_68 = arith.constant 1.000000e+00 : f32
    %269 = vector.broadcast %cst_68 : f32 to vector<2x128xf32>
    %270 = arith.addf %269, %268 : vector<2x128xf32>
    %271 = arith.divf %269, %270 : vector<2x128xf32>
    %272 = vector.extract_strided_slice %271 {offsets = [0, 0], sizes = [2, 32], strides = [1, 1]} : vector<2x128xf32> to vector<2x32xf32>
    %273 = vector.extract_strided_slice %271 {offsets = [0, 32], sizes = [2, 32], strides = [1, 1]} : vector<2x128xf32> to vector<2x32xf32>
    %274 = vector.extract_strided_slice %271 {offsets = [0, 64], sizes = [2, 32], strides = [1, 1]} : vector<2x128xf32> to vector<2x32xf32>
    %cst_69 = arith.constant 2.000000e+00 : f32
    %275 = vector.broadcast %cst_69 : f32 to vector<2x32xf32>
    %276 = arith.mulf %275, %274 : vector<2x32xf32>
    %cst_70 = arith.constant 1.000000e+00 : f32
    %277 = vector.broadcast %cst_70 : f32 to vector<2x32xf32>
    %278 = arith.subf %276, %277 : vector<2x32xf32>
    %279 = vector.extract_strided_slice %271 {offsets = [0, 96], sizes = [2, 32], strides = [1, 1]} : vector<2x128xf32> to vector<2x32xf32>
    %280 = arith.mulf %273, %238 : vector<2x32xf32>
    %281 = arith.mulf %272, %278 : vector<2x32xf32>
    %282 = arith.addf %280, %281 : vector<2x32xf32>
    %283 = math.tanh %282 : vector<2x32xf32>
    %284 = arith.mulf %279, %283 : vector<2x32xf32>
    %cst_71 = arith.constant dense<0.000000e+00> : vector<2x128xf32>
    %285 = tpu.matmul %284, %7, %cst_71 {dimension_numbers = #tpu.dot_dimension_numbers<[1], [0], [0], [1], [0, 0, 1, 1], [], []>} : vector<2x32xf32>, vector<32x128xf32>, vector<2x128xf32> -> vector<2x128xf32>
    %286 = vector.extract_strided_slice %5 {offsets = [12, 0], sizes = [2, 128], strides = [1, 1]} : vector<16x128xf32> to vector<2x128xf32>
    %287 = arith.addf %286, %263 : vector<2x128xf32>
    %288 = arith.negf %287 : vector<2x128xf32>
    %289 = math.exp %288 : vector<2x128xf32>
    %cst_72 = arith.constant 1.000000e+00 : f32
    %290 = vector.broadcast %cst_72 : f32 to vector<2x128xf32>
    %291 = arith.addf %290, %289 : vector<2x128xf32>
    %292 = arith.divf %290, %291 : vector<2x128xf32>
    %293 = vector.extract_strided_slice %292 {offsets = [0, 0], sizes = [2, 32], strides = [1, 1]} : vector<2x128xf32> to vector<2x32xf32>
    %294 = vector.extract_strided_slice %292 {offsets = [0, 32], sizes = [2, 32], strides = [1, 1]} : vector<2x128xf32> to vector<2x32xf32>
    %295 = vector.extract_strided_slice %292 {offsets = [0, 64], sizes = [2, 32], strides = [1, 1]} : vector<2x128xf32> to vector<2x32xf32>
    %cst_73 = arith.constant 2.000000e+00 : f32
    %296 = vector.broadcast %cst_73 : f32 to vector<2x32xf32>
    %297 = arith.mulf %296, %295 : vector<2x32xf32>
    %cst_74 = arith.constant 1.000000e+00 : f32
    %298 = vector.broadcast %cst_74 : f32 to vector<2x32xf32>
    %299 = arith.subf %297, %298 : vector<2x32xf32>
    %300 = vector.extract_strided_slice %292 {offsets = [0, 96], sizes = [2, 32], strides = [1, 1]} : vector<2x128xf32> to vector<2x32xf32>
    %301 = arith.mulf %294, %259 : vector<2x32xf32>
    %302 = arith.mulf %293, %299 : vector<2x32xf32>
    %303 = arith.addf %301, %302 : vector<2x32xf32>
    %304 = math.tanh %303 : vector<2x32xf32>
    %305 = arith.mulf %300, %304 : vector<2x32xf32>
    %cst_75 = arith.constant dense<0.000000e+00> : vector<2x256xf32>
    %306 = tpu.matmul %305, %6, %cst_75 {dimension_numbers = #tpu.dot_dimension_numbers<[1], [0], [0], [1], [0, 0, 1, 1], [], []>} : vector<2x32xf32>, vector<32x256xf32>, vector<2x256xf32> -> vector<2x256xf32>
    %307 = vector.extract_strided_slice %306 {offsets = [0, 0], sizes = [2, 128], strides = [1, 1]} : vector<2x256xf32> to vector<2x128xf32>
    %308 = vector.extract_strided_slice %306 {offsets = [0, 128], sizes = [2, 128], strides = [1, 1]} : vector<2x256xf32> to vector<2x128xf32>
    %309 = arith.addf %308, %285 : vector<2x128xf32>
    %310 = arith.addf %309, %10 : vector<2x128xf32>
    %311 = arith.negf %310 : vector<2x128xf32>
    %312 = math.exp %311 : vector<2x128xf32>
    %cst_76 = arith.constant 1.000000e+00 : f32
    %313 = vector.broadcast %cst_76 : f32 to vector<2x128xf32>
    %314 = arith.addf %313, %312 : vector<2x128xf32>
    %315 = arith.divf %313, %314 : vector<2x128xf32>
    %316 = vector.extract_strided_slice %315 {offsets = [0, 0], sizes = [2, 32], strides = [1, 1]} : vector<2x128xf32> to vector<2x32xf32>
    %317 = vector.extract_strided_slice %315 {offsets = [0, 32], sizes = [2, 32], strides = [1, 1]} : vector<2x128xf32> to vector<2x32xf32>
    %318 = vector.extract_strided_slice %315 {offsets = [0, 64], sizes = [2, 32], strides = [1, 1]} : vector<2x128xf32> to vector<2x32xf32>
    %cst_77 = arith.constant 2.000000e+00 : f32
    %319 = vector.broadcast %cst_77 : f32 to vector<2x32xf32>
    %320 = arith.mulf %319, %318 : vector<2x32xf32>
    %cst_78 = arith.constant 1.000000e+00 : f32
    %321 = vector.broadcast %cst_78 : f32 to vector<2x32xf32>
    %322 = arith.subf %320, %321 : vector<2x32xf32>
    %323 = vector.extract_strided_slice %315 {offsets = [0, 96], sizes = [2, 32], strides = [1, 1]} : vector<2x128xf32> to vector<2x32xf32>
    %324 = arith.mulf %317, %282 : vector<2x32xf32>
    %325 = arith.mulf %316, %322 : vector<2x32xf32>
    %326 = arith.addf %324, %325 : vector<2x32xf32>
    %327 = math.tanh %326 : vector<2x32xf32>
    %328 = arith.mulf %323, %327 : vector<2x32xf32>
    %cst_79 = arith.constant dense<0.000000e+00> : vector<2x128xf32>
    %329 = tpu.matmul %328, %7, %cst_79 {dimension_numbers = #tpu.dot_dimension_numbers<[1], [0], [0], [1], [0, 0, 1, 1], [], []>} : vector<2x32xf32>, vector<32x128xf32>, vector<2x128xf32> -> vector<2x128xf32>
    %330 = vector.extract_strided_slice %5 {offsets = [14, 0], sizes = [2, 128], strides = [1, 1]} : vector<16x128xf32> to vector<2x128xf32>
    %331 = arith.addf %330, %307 : vector<2x128xf32>
    %332 = arith.negf %331 : vector<2x128xf32>
    %333 = math.exp %332 : vector<2x128xf32>
    %cst_80 = arith.constant 1.000000e+00 : f32
    %334 = vector.broadcast %cst_80 : f32 to vector<2x128xf32>
    %335 = arith.addf %334, %333 : vector<2x128xf32>
    %336 = arith.divf %334, %335 : vector<2x128xf32>
    %337 = vector.extract_strided_slice %336 {offsets = [0, 0], sizes = [2, 32], strides = [1, 1]} : vector<2x128xf32> to vector<2x32xf32>
    %338 = vector.extract_strided_slice %336 {offsets = [0, 32], sizes = [2, 32], strides = [1, 1]} : vector<2x128xf32> to vector<2x32xf32>
    %339 = vector.extract_strided_slice %336 {offsets = [0, 64], sizes = [2, 32], strides = [1, 1]} : vector<2x128xf32> to vector<2x32xf32>
    %cst_81 = arith.constant 2.000000e+00 : f32
    %340 = vector.broadcast %cst_81 : f32 to vector<2x32xf32>
    %341 = arith.mulf %340, %339 : vector<2x32xf32>
    %cst_82 = arith.constant 1.000000e+00 : f32
    %342 = vector.broadcast %cst_82 : f32 to vector<2x32xf32>
    %343 = arith.subf %341, %342 : vector<2x32xf32>
    %344 = vector.extract_strided_slice %336 {offsets = [0, 96], sizes = [2, 32], strides = [1, 1]} : vector<2x128xf32> to vector<2x32xf32>
    %345 = arith.mulf %338, %303 : vector<2x32xf32>
    %346 = arith.mulf %337, %343 : vector<2x32xf32>
    %347 = arith.addf %345, %346 : vector<2x32xf32>
    %348 = math.tanh %347 : vector<2x32xf32>
    %349 = arith.mulf %344, %348 : vector<2x32xf32>
    %cst_83 = arith.constant dense<0.000000e+00> : vector<2x256xf32>
    %350 = tpu.matmul %349, %6, %cst_83 {dimension_numbers = #tpu.dot_dimension_numbers<[1], [0], [0], [1], [0, 0, 1, 1], [], []>} : vector<2x32xf32>, vector<32x256xf32>, vector<2x256xf32> -> vector<2x256xf32>
    %351 = vector.extract_strided_slice %350 {offsets = [0, 128], sizes = [2, 128], strides = [1, 1]} : vector<2x256xf32> to vector<2x128xf32>
    %352 = arith.addf %351, %329 : vector<2x128xf32>
    %353 = arith.addf %352, %10 : vector<2x128xf32>
    %354 = arith.negf %353 : vector<2x128xf32>
    %355 = math.exp %354 : vector<2x128xf32>
    %cst_84 = arith.constant 1.000000e+00 : f32
    %356 = vector.broadcast %cst_84 : f32 to vector<2x128xf32>
    %357 = arith.addf %356, %355 : vector<2x128xf32>
    %358 = arith.divf %356, %357 : vector<2x128xf32>
    %359 = vector.extract_strided_slice %358 {offsets = [0, 0], sizes = [2, 32], strides = [1, 1]} : vector<2x128xf32> to vector<2x32xf32>
    %360 = vector.extract_strided_slice %358 {offsets = [0, 32], sizes = [2, 32], strides = [1, 1]} : vector<2x128xf32> to vector<2x32xf32>
    %361 = vector.extract_strided_slice %358 {offsets = [0, 64], sizes = [2, 32], strides = [1, 1]} : vector<2x128xf32> to vector<2x32xf32>
    %cst_85 = arith.constant 2.000000e+00 : f32
    %362 = vector.broadcast %cst_85 : f32 to vector<2x32xf32>
    %363 = arith.mulf %362, %361 : vector<2x32xf32>
    %cst_86 = arith.constant 1.000000e+00 : f32
    %364 = vector.broadcast %cst_86 : f32 to vector<2x32xf32>
    %365 = arith.subf %363, %364 : vector<2x32xf32>
    %366 = vector.extract_strided_slice %358 {offsets = [0, 96], sizes = [2, 32], strides = [1, 1]} : vector<2x128xf32> to vector<2x32xf32>
    %367 = arith.mulf %360, %326 : vector<2x32xf32>
    %368 = arith.mulf %359, %365 : vector<2x32xf32>
    %369 = arith.addf %367, %368 : vector<2x32xf32>
    %370 = math.tanh %369 : vector<2x32xf32>
    %371 = arith.mulf %366, %370 : vector<2x32xf32>
    %c0_87 = arith.constant 0 : index
    %c0_88 = arith.constant 0 : index
    %c0_89 = arith.constant 0 : index
    %372 = vector.load %arg11[%c0_87, %c0_88, %c0_89] : memref<2x2x32xf32, #tpu.memory_space<vmem>>, vector<1x2x32xf32>
    %373 = vector.shape_cast %372 : vector<1x2x32xf32> to vector<2x32xf32>
    %374 = vector.shape_cast %349 : vector<2x32xf32> to vector<1x2x32xf32>
    tpu.vector_store %arg11[%c0_87, %c0_88, %c0_89], %374 {strides = array<i32>} : memref<2x2x32xf32, #tpu.memory_space<vmem>>, vector<1x2x32xf32>,
    %c1_90 = arith.constant 1 : index
    %c0_91 = arith.constant 0 : index
    %c0_92 = arith.constant 0 : index
    %375 = vector.load %arg11[%c1_90, %c0_91, %c0_92] : memref<2x2x32xf32, #tpu.memory_space<vmem>>, vector<1x2x32xf32>
    %376 = vector.shape_cast %375 : vector<1x2x32xf32> to vector<2x32xf32>
    %377 = vector.shape_cast %371 : vector<2x32xf32> to vector<1x2x32xf32>
    tpu.vector_store %arg11[%c1_90, %c0_91, %c0_92], %377 {strides = array<i32>} : memref<2x2x32xf32, #tpu.memory_space<vmem>>, vector<1x2x32xf32>,
    %c0_93 = arith.constant 0 : index
    %c0_94 = arith.constant 0 : index
    %c0_95 = arith.constant 0 : index
    %378 = vector.load %arg12[%c0_93, %c0_94, %c0_95] : memref<2x2x32xf32, #tpu.memory_space<vmem>>, vector<1x2x32xf32>
    %379 = vector.shape_cast %378 : vector<1x2x32xf32> to vector<2x32xf32>
    %380 = vector.shape_cast %347 : vector<2x32xf32> to vector<1x2x32xf32>
    tpu.vector_store %arg12[%c0_93, %c0_94, %c0_95], %380 {strides = array<i32>} : memref<2x2x32xf32, #tpu.memory_space<vmem>>, vector<1x2x32xf32>,
    %c1_96 = arith.constant 1 : index
    %c0_97 = arith.constant 0 : index
    %c0_98 = arith.constant 0 : index
    %381 = vector.load %arg12[%c1_96, %c0_97, %c0_98] : memref<2x2x32xf32, #tpu.memory_space<vmem>>, vector<1x2x32xf32>
    %382 = vector.shape_cast %381 : vector<1x2x32xf32> to vector<2x32xf32>
    %383 = vector.shape_cast %369 : vector<2x32xf32> to vector<1x2x32xf32>
    tpu.vector_store %arg12[%c1_96, %c0_97, %c0_98], %383 {strides = array<i32>} : memref<2x2x32xf32, #tpu.memory_space<vmem>>, vector<1x2x32xf32>,
    %384 = tpu.concatenate %64, %108, %152, %196, %240, %284, %328, %371 in 0 : vector<2x32xf32>, vector<2x32xf32>, vector<2x32xf32>, vector<2x32xf32>, vector<2x32xf32>, vector<2x32xf32>, vector<2x32xf32>, vector<2x32xf32> -> vector<16x32xf32>
    %c0_99 = arith.constant 0 : index
    %c0_100 = arith.constant 0 : index
    %385 = vector.load %arg8[%c0_99, %c0_100] : memref<32x64xf32, #tpu.memory_space<vmem>>, vector<32x64xf32>
    %cst_101 = arith.constant dense<0.000000e+00> : vector<16x64xf32>
    %386 = tpu.matmul %384, %385, %cst_101 {dimension_numbers = #tpu.dot_dimension_numbers<[1], [0], [0], [1], [0, 0, 1, 1], [], []>} : vector<16x32xf32>, vector<32x64xf32>, vector<16x64xf32> -> vector<16x64xf32>
    %c0_102 = arith.constant 0 : index
    %c0_103 = arith.constant 0 : index
    %387 = vector.load %arg9[%c0_102, %c0_103] : memref<1x64xf32, #tpu.memory_space<vmem>>, vector<1x64xf32>
    %388 = vector.broadcast %387 : vector<1x64xf32> to vector<16x64xf32>
    %389 = arith.addf %386, %388 : vector<16x64xf32>
    %c0_104 = arith.constant 0 : index
    %c0_105 = arith.constant 0 : index
    %390 = vector.load %arg10[%c0_104, %c0_105] : memref<16x64xf32, #tpu.memory_space<vmem>>, vector<16x64xf32>
    tpu.vector_store %arg10[%c0_104, %c0_105], %389 {strides = array<i32>} : memref<16x64xf32, #tpu.memory_space<vmem>>, vector<16x64xf32>,
    return
  }
}

</mosaic_0001>

<bundles_post_ra>
// kernel: tpu_custom_call.1
= control target key start
LH: loop header
LB: loop body
LE: loop exit
PB: predicated region body
PF: predicated region fallthrough
CT: control target
= control target key end

     0   :  { %18 = vsyncpa [#allocation3], 0  ;;  %s3300_s0 = inlined_call_operand.hbm [shape: f32[16,32], index: 0, kind: input, shape index: {}]   ;;  %s3301_s1 = inlined_call_operand.hbm [shape: f32[2,2,32], index: 1, kind: input, shape index: {}]   ;;  %s3302_s2 = inlined_call_operand.hbm [shape: f32[2,2,32], index: 2, kind: input, shape index: {}]   ;;  %s3303_s3 = inlined_call_operand.hbm [shape: f32[32,128], index: 3, kind: input, shape index: {}]   ;;  %s3304_s4 = inlined_call_operand.hbm [shape: f32[32,256], index: 4, kind: input, shape index: {}]   ;;  %s3305_s5 = inlined_call_operand.vmem [shape: f32[1,128], index: 5, kind: input, shape index: {}]   ;;  %s3306_s6 = inlined_call_operand.hbm [shape: f32[32,128], index: 6, kind: input, shape index: {}]   ;;  %s3307_s7 = inlined_call_operand.vmem [shape: f32[1,128], index: 7, kind: input, shape index: {}]   ;;  %s3308_s8 = inlined_call_operand.hbm [shape: f32[32,64], index: 8, kind: input, shape index: {}]   ;;  %s3309_s9 = inlined_call_operand.vmem [shape: f32[1,64], index: 9, kind: input, shape index: {}]   ;;  %s3310_s10 = inlined_call_operand.hbm [shape: f32[16,64], index: 10, kind: output, shape index: {0}]   ;;  %s3311_s11 = inlined_call_operand.hbm [shape: f32[2,2,32], index: 11, kind: output, shape index: {1}]   ;;  %s3312_s12 = inlined_call_operand.hbm [shape: f32[2,2,32], index: 12, kind: output, shape index: {2}]  }
   0x1   :  { %19 = vsyncpa [#allocation6], 0 }
   0x2   :  { %20 = vsyncpa [#allocation9], 0 }
   0x3   :  { %21 = vsyncpa [#allocation12], 0 }
   0x4   :  { %22 = vsyncpa [#allocation4], 0 }
   0x5   :  { %23 = vsyncpa [#allocation16], 0  ;;  %s2771_s21 = smov [#allocation5]  }
   0x6   :  { %s41_s22 = sshll.u32 %s2771_s21, 4  ;;  %s42_s22 = int_to_ptr.vmem [resolvable:$true] %s41_s22 }
   0x7   :  { %s2567_s23 = scalar_lea.vmem %s42_s22, 64  ;;  %p2572_p1 = scmp.lt.s32.totalorder %s42_s22, %s42_s22 }
   0x8   :  { %p2568_p0 = scmp.ne.s32.totalorder %s42_s22, %s2567_s23  ;;  %p2573_p2 = scmp.lt.s32.totalorder %s2567_s23, %s2567_s23 }
   0xa   :  { %p2574_p3 = por %p2573_p2, %p2572_p1 }
   0xc   :  { %p2575_p4 = pnand %p2574_p3, %p2568_p0 }
   0xe   :  { %2578 = shalt.err (!%p2575_p4)
}
   0xf   :  { %s2772_s24 = smov 32   ;;  %s2773_s25 = smov 2  }
  0x10   :  { %47 = dma.hbm_to_vmem [thread:$0]  %s3301_s1, 64, %s42_s22, [#allocation6], %s2772_s24, %s2772_s24, %s2773_s25  }
  0x11   :  { %s2774_s28 = smov [#allocation8]   ;;  %s2775_s30 = smov [#allocation11]  }
  0x12   :  { %s65_s29 = sshll.u32 %s2774_s28, 4  ;;  %s91_s13 = sshll.u32 %s2775_s30, 4  ;;  %s66_s29 = int_to_ptr.vmem [resolvable:$true] %s65_s29  ;;  %s92_s13 = int_to_ptr.vmem [resolvable:$true] %s91_s13 }
  0x13   :  { %s2587_s14 = scalar_lea.vmem %s66_s29, 512  ;;  %p2592_p6 = scmp.lt.s32.totalorder %s66_s29, %s66_s29 }
  0x14   :  { %p2588_p5 = scmp.ne.s32.totalorder %s66_s29, %s2587_s14  ;;  %p2593_p7 = scmp.lt.s32.totalorder %s2587_s14, %s2587_s14 }
  0x16   :  { %p2594_p8 = por %p2593_p7, %p2592_p6 }
  0x18   :  { %p2595_p9 = pnand %p2594_p8, %p2588_p5 }
  0x1a   :  { %2598 = shalt.err (!%p2595_p9)
}
  0x1b   :  { %s2776_s15 = smov 128   ;;  %s2777_s16 = smov 8  }
  0x1c   :  { %71 = dma.hbm_to_vmem [thread:$0]  %s3303_s3, 512, %s66_s29, [#allocation9], %s2776_s15, %s2776_s15, %s2777_s16  }
  0x1d   :  { %s2607_s1 = scalar_lea.vmem %s92_s13, 512  ;;  %p2612_p11 = scmp.lt.s32.totalorder %s92_s13, %s92_s13 }
  0x1e   :  { %p2608_p10 = scmp.ne.s32.totalorder %s92_s13, %s2607_s1  ;;  %p2613_p12 = scmp.lt.s32.totalorder %s2607_s1, %s2607_s1 }
  0x20   :  { %p2614_p13 = por %p2613_p12, %p2612_p11 }
  0x22   :  { %p2615_p0 = pnand %p2614_p13, %p2608_p10 }
  0x24   :  { %2618 = shalt.err (!%p2615_p0)
}
  0x25   :  { %97 = dma.hbm_to_vmem [thread:$0]  %s3306_s6, 512, %s92_s13, [#allocation12], %s2776_s15, %s2776_s15, %s2777_s16  }
  0x26   :  { %s2778_s21 = smov [#allocation2]   ;;  %s2779_s23 = smov [#allocation7]  }
  0x27   :  { %s29_s22 = sshll.u32 %s2778_s21, 4  ;;  %s53_s3 = sshll.u32 %s2779_s23, 4  ;;  %s30_s22 = int_to_ptr.vmem [resolvable:$true] %s29_s22  ;;  %s54_s3 = int_to_ptr.vmem [resolvable:$true] %s53_s3 }
  0x28   :  { %s2627_s26 = scalar_lea.vmem %s30_s22, 256  ;;  %p2632_p2 = scmp.lt.s32.totalorder %s30_s22, %s30_s22 }
  0x29   :  { %p2628_p1 = scmp.ne.s32.totalorder %s30_s22, %s2627_s26  ;;  %p2633_p3 = scmp.lt.s32.totalorder %s2627_s26, %s2627_s26 }
  0x2b   :  { %p2634_p4 = por %p2633_p3, %p2632_p2 }
  0x2d   :  { %p2635_p5 = pnand %p2634_p4, %p2628_p1 }
  0x2f   :  { %2638 = shalt.err (!%p2635_p5)
}
  0x30   :  { %35 = dma.hbm_to_vmem [thread:$0]  %s3300_s0, 256, %s30_s22, [#allocation3], %s2776_s15, %s2776_s15, %s2777_s16  }
  0x31   :  { %s2647_s6 = scalar_lea.vmem %s54_s3, 64  ;;  %p2652_p7 = scmp.lt.s32.totalorder %s54_s3, %s54_s3 }
  0x32   :  { %p2648_p6 = scmp.ne.s32.totalorder %s54_s3, %s2647_s6  ;;  %p2653_p8 = scmp.lt.s32.totalorder %s2647_s6, %s2647_s6 }
  0x34   :  { %p2654_p9 = por %p2653_p8, %p2652_p7 }
  0x36   :  { %p2655_p10 = pnand %p2654_p9, %p2648_p6 }
  0x38   :  { %2658 = shalt.err (!%p2655_p10)
}
  0x39   :  { %59 = dma.hbm_to_vmem [thread:$0]  %s3302_s2, 64, %s54_s3, [#allocation6], %s2772_s24, %s2772_s24, %s2773_s25  }
  0x3a   :  { %s2780_s13 = smov [#allocation10]  }
  0x3b   :  { %s77_s14 = sshll.u32 %s2780_s13, 4  ;;  %s78_s14 = int_to_ptr.vmem [resolvable:$true] %s77_s14 }
  0x3c   :  { %s2667_s17 = scalar_lea.vmem %s78_s14, 1024  ;;  %p2672_p12 = scmp.lt.s32.totalorder %s78_s14, %s78_s14 }
  0x3d   :  { %p2668_p11 = scmp.ne.s32.totalorder %s78_s14, %s2667_s17  ;;  %p2673_p13 = scmp.lt.s32.totalorder %s2667_s17, %s2667_s17 }
  0x3f   :  { %p2674_p0 = por %p2673_p13, %p2672_p12 }
  0x41   :  { %p2675_p1 = pnand %p2674_p0, %p2668_p11 }
  0x43   :  { %2678 = shalt.err (!%p2675_p1)
}
  0x44   :  { %s2781_s0 = smov 256   ;;  %s2782_s18 = smov 16  }
  0x45   :  { %83 = dma.hbm_to_vmem [thread:$0]  %s3304_s4, 1024, %s78_s14, [#allocation9], %s2781_s0, %s2781_s0, %s2782_s18  }
  0x46   :  { %s2783_s20 = smov [#allocation13]  }
  0x47   :  { %s105_s21 = sshll.u32 %s2783_s20, 4  ;;  %s106_s21 = int_to_ptr.vmem [resolvable:$true] %s105_s21 }
  0x48   :  { %s2687_s2 = scalar_lea.vmem %s106_s21, 512  ;;  %p2692_p3 = scmp.lt.s32.totalorder %s106_s21, %s106_s21 }
  0x49   :  { %p2688_p2 = scmp.ne.s32.totalorder %s106_s21, %s2687_s2  ;;  %p2693_p4 = scmp.lt.s32.totalorder %s2687_s2, %s2687_s2 }
  0x4b   :  { %p2694_p5 = por %p2693_p4, %p2692_p3 }
  0x4d   :  { %p2695_p6 = pnand %p2694_p5, %p2688_p2 }
  0x4f   :  { %2698 = shalt.err (!%p2695_p6)
}
  0x50   :  { %111 = dma.hbm_to_vmem [thread:$0]  %s3308_s8, 512, %s106_s21, [#allocation12], %s2776_s15, %s2776_s15, %s2777_s16  }
  0x51   :  { %2759 = dma.done.wait [#allocation3], 256  }
  0x52   :  { %2760 = vsyncadd [#allocation3], 4294967040 }
  0x53   :  { %2761 = dma.done.wait [#allocation6], 128  }
  0x54   :  { %2762 = vsyncadd [#allocation6], 4294967168 }
  0x55   :  { %2763 = dma.done.wait [#allocation9], 1536  }
  0x56   :  { %2764 = vsyncadd [#allocation9], 4294965760 }
  0x57   :  { %2765 = dma.done.wait [#allocation12], 1024  }
  0x58   :  { %2766 = vsyncadd [#allocation12], 4294966272  ;;  %v2784_v0 = vmov 0.0   ;;  %vm2785_vm0 = vmmov 0   ;;  %v140_v1 = vld [vmem:[#allocation8 + $0x18] sm:$0xff]  ;;  %v139_v2 = vld [vmem:[#allocation8 + $0x10] sm:$0xff] }
  0x59   :  { %2328 = vmatprep.subr.mxu1 %v2784_v0  ;;  %2336 = vmatprep.mubr.msk.f32.mxu1 %vm2785_vm0, %v2784_v0  ;;  %v2898_v3 = vld [vmem:[#allocation10 + $0x30] sm:$0xff]  ;;  %v2901_v4 = vld [vmem:[#allocation10 + $0x20] sm:$0xff]  ;;  %v138_v5 = vld [vmem:[#allocation8 + $0x8] sm:$0xff]  ;;  %vm148_vm1 = vcmask 261120   ;;  %s2786_s3 = smov 64   ;;  %vm2045_vm2 = vcmask 1041408  }
  0x5a   :  { %2317 = vmatprep.subr.mxu0 %v140_v1  ;;  %2329 = vmatpush3.msra.mxu1 %v2898_v3  ;;  %v135_v6 = vld [vmem:[#allocation2] sm:$0xff]  ;;  %v2905_v7 = vld [vmem:[#allocation10 + $0x10] sm:$0xff]  ;;  %v137_v8 = vld [vmem:[#allocation8] sm:$0xff]  ;;  %vm2047_vm3 = vcmask 1043456   ;;  %vm2049_vm4 = vcmask 1045504   ;;  %vm2013_vm5 = vcmask 261126  }
  0x5b   :  { %2318 = vmatpush3.msra.mxu0 %v140_v1  ;;  %2330 = vmatprep.subr.mxu1 %v2784_v0  ;;  %v2909_v9 = vld [vmem:[#allocation10] sm:$0xff]  ;;  %v136_v10 = vld [vmem:[#allocation2 + $0x8] sm:$0xff]  ;;  %v249_v11 = vld [vmem:[#allocation5] sm:$0x3]  ;;  %vm2020_vm6 = vcmask 254976   ;;  %s2788_s6 = smov [#allocation15]  }
  0x5c   :  { %2319 = vmatprep.subr.mxu0 %v139_v2  ;;  %2331 = vmatpush3.msra.mxu1 %v2901_v4  ;;  %v2204_v12 = vld [vmem:[%s3305_s5] ss:$0 sm:$0xff]  ;;  %v250_v26 = vld [vmem:[#allocation7] sm:$0x3]  ;;  %v2942_v36 = vld [vmem:[#allocation11 + $0x10] sm:$0xff]  ;;  %s2170_s29 = sshll.u32 %s2788_s6, 4  ;;  %s2171_s29 = int_to_ptr.vmem [resolvable:$true] %s2170_s29 }
  0x5d   :  { %2320 = vmatpush3.msra.mxu0 %v139_v2  ;;  %2332 = vmatprep.subr.mxu1 %v2784_v0  ;;  %v2934_v33 = vld [vmem:[#allocation10 + $0x38] sm:$0xff]  ;;  %v2936_v34 = vld [vmem:[#allocation10 + $0x28] sm:$0xff]  ;;  %v2964_v41 = vld [vmem:[#allocation11] sm:$0xff]  ;;  %s2699_s30 = scalar_lea.vmem %s2171_s29, 64  ;;  %p2704_p8 = scmp.lt.s32.totalorder %s2171_s29, %s2171_s29 }
  0x5e   :  { %2321 = vmatprep.subr.mxu0 %v138_v5  ;;  %2325 = vmatprep.mubr.msk.f32.mxu0 %vm148_vm1, %v135_v6  ;;  %v2938_v35 = vld [vmem:[#allocation11 + $0x18] sm:$0xff]  ;;  %v2948_v38 = vld [vmem:[#allocation11 + $0x8] sm:$0xff]  ;;  %p2700_p7 = scmp.ne.s32.totalorder %s2171_s29, %s2699_s30  ;;  %p2705_p9 = scmp.lt.s32.totalorder %s2699_s30, %s2699_s30 }
  0x5f   :  { %2322 = vmatpush3.msra.mxu0 %v138_v5  ;;  %2333 = vmatpush3.msra.mxu1 %v2905_v7  ;;  %v2946_v37 = vld [vmem:[#allocation10 + $0x18] sm:$0xff]  ;;  %v2954_v39 = vld [vmem:[#allocation10 + $0x8] sm:$0xff] }
  0x60   :  { %2323 = vmatprep.subr.mxu0 %v137_v8  ;;  %2334 = vmatprep.subr.mxu1 %v2784_v0  ;;  %v252_v42 = vld [vmem:[#allocation5 + $0x2] sm:$0x3]  ;;  %v2993_v50 = vld [vmem:[%s3307_s7] ss:$0 sm:$0xff]  ;;  %v254_v6 = vld [vmem:[#allocation7 + $0x2] sm:$0x3]  ;;  %p2706_p10 = por %p2705_p9, %p2704_p8 }
  0x61   :  { %2324 = vmatpush3.msra.mxu0 %v137_v8  ;;  %2335 = vmatpush3.msra.mxu1 %v2909_v9 }
  0x62   :  { %2326 = vmatmul.mubr.msk.f32.vlgmr.msra.gmra.mxu0 %vm148_vm1, %v136_v10  ;;  %2337 = vmatmul.mubr.msk.f32.vlgmr.msra.gmra.mxu1 %vm148_vm1, %v249_v11  ;;  %p2707_p11 = pnand %p2706_p10, %p2700_p7 }
  0x63   :  { %2339 = vmatprep.subr.mxu0 %v2784_v0  ;;  %500 = vmatprep.mubr.f32.mxu1 %v2784_v0 }
  0x64   :  { %2347 = vmatprep.mubr.msk.f32.mxu0 %vm2785_vm0, %v2784_v0  ;;  %460 = vmatprep.subr.mxu1 %v2934_v33 }
  0x65   :  { %2340 = vmatpush3.msra.mxu0 %v2938_v35  ;;  %461 = vmatpush1.msra.mxu1 %v2898_v3 }
  0x66   :  { %2341 = vmatprep.subr.mxu0 %v2784_v0  ;;  %462 = vmatprep.subr.mxu1 %v2936_v34 }
  0x67   :  { %2342 = vmatpush3.msra.mxu0 %v2942_v36  ;;  %463 = vmatpush1.msra.mxu1 %v2901_v4 }
  0x68   :  { %2343 = vmatprep.subr.mxu0 %v2784_v0  ;;  %464 = vmatprep.subr.mxu1 %v2946_v37 }
  0x69   :  { %2344 = vmatpush3.msra.mxu0 %v2948_v38  ;;  %465 = vmatpush1.msra.mxu1 %v2905_v7 }
  0x6a   :  { %2345 = vmatprep.subr.mxu0 %v2784_v0  ;;  %466 = vmatprep.subr.mxu1 %v2954_v39 }
  0x6b   :  { %467 = vmatpush1.msra.mxu1 %v2909_v9  ;;  %2346 = vmatpush3.msra.mxu0 %v2964_v41 }
  0x6c   :  { %675 = vmatprep.subr.mxu1 %v2934_v33  ;;  %2348 = vmatmul.mubr.msk.f32.vlgmr.msra.gmra.mxu0 %vm148_vm1, %v252_v42 }
  0x6d   :  { %2350 = vmatprep.subr.mxu0 %v2784_v0  ;;  %2358 = vmatprep.mubr.msk.f32.mxu0 %vm2785_vm0, %v2784_v0 }
  0x6e   :  { %2351 = vmatpush3.msra.mxu0 %v2938_v35 }
  0x6f   :  { %2352 = vmatprep.subr.mxu0 %v2784_v0 }
  0x70   :  { %2353 = vmatpush3.msra.mxu0 %v2942_v36 }
  0x71   :  { %2354 = vmatprep.subr.mxu0 %v2784_v0 }
  0x72   :  { %2355 = vmatpush3.msra.mxu0 %v2948_v38 }
  0x73   :  { %2356 = vmatprep.subr.mxu0 %v2784_v0 }
  0x74   :  { %2357 = vmatpush3.msra.mxu0 %v2964_v41 }
  0x75   :  { %2361 = vmatprep.subr.mxu0 %v2784_v0 }
 0x122   :  { %v2327_v13 = vpop.f32.mrf.mxu0  ;;  %v324_v14 = vpop.f32.mrf.mxu1 }
 0x123   :  { %v2923_v15 = vadd.f32 %v2327_v13, %v2204_v12 }
 0x124   :  { %v221_v16 = vpop.f32.mrf.mxu0  ;;  %v2338_v17 = vpop.f32.mrf.mxu1 }
 0x125   :  { %v2925_v18 = vadd.f32 %v2204_v12, %v221_v16 }
 0x127   :  { %v401_v19 = vadd.f32 %v324_v14, %v2925_v18 }
 0x129   :  { %v2210_v20 = vmul.f32 -1.442695, %v401_v19 }
 0x12b   :  { %2458 = vpow2.f32 %v2210_v20 }
 0x12c   :  { %v397_v46 = vpop.f32.mrf.mxu0 }
 0x12e   :  { %v2349_v47 = vpop.f32.mrf.mxu0 }
 0x138   :  { %v2459_v21 = vpop.eup %2458 }
 0x139   :  { %v405_v22 = vadd.f32 1.0, %v2459_v21 }
 0x13b   :  { %2460 = vrcp.f32 %v405_v22 }
 0x148   :  { %v2461_v23 = vpop.eup %2460 }
 0x149   :  { %v408_v24 = vmul.f32 2.0, %v2461_v23 }
 0x14b   :  { %v2211_v25 = vadd.f32 -1.0, %v408_v24 }
 0x14d   :  { %416 = vrot.lane.b32.xlu0 %v2211_v25, %s2786_s3 }
 0x151   :  { %411 = vrot.lane.b32.xlu0 %v250_v26, %s2772_s24 }
 0x1bf   :  { %v417_v27 = vpop.permute.xlu0 %416 }
 0x1c0   :  { %v419_v28 = vmul.f32 %v2461_v23, %v417_v27 }
 0x1c2   :  { %421 = vrot.lane.b32.xlu1 %v419_v28, %s2772_s24 }
 0x1c3   :  { %v412_v29 = vpop.permute.xlu0 %411 }
 0x1c4   :  { %v414_v30 = vmul.f32 %v2461_v23, %v412_v29 }
 0x234   :  { %v422_v31 = vpop.permute.xlu1 %421 }
 0x235   :  { %v2931_v32 = vadd.f32 %v422_v31, %v414_v30 }
 0x237   :  { %2462 = vtanh.f32 %v2931_v32  ;;  %v626_v13 = vrot.slane %v2931_v32, 6 }
 0x244   :  { %v2463_v40 = vpop.eup %2462 }
 0x245   :  { %427 = vrot.lane.b32.xlu1 %v2463_v40, %s2786_s3 }
 0x2b7   :  { %v428_v43 = vpop.permute.xlu1 %427 }
 0x2b8   :  { %v430_v44 = vmul.f32 %v2461_v23, %v428_v43 }
 0x2ba   :  { %432 = vrot.lane.b32.xlu0 %v430_v44, %s2772_s24 }
 0x32c   :  { %v433_v45 = vpop.permute.xlu0 %432 }
 0x32d   :  { %2212 = vmatmul.mubr.msk.f32.vlgmr.msra.gmra.mxu1 %vm148_vm1, %v433_v45 }
 0x32e   :  { %676 = vmatpush1.msra.mxu1 %v2898_v3  ;;  %715 = vmatprep.mubr.f32.mxu1 %v2784_v0 }
 0x32f   :  { %677 = vmatprep.subr.mxu1 %v2936_v34 }
 0x330   :  { %678 = vmatpush1.msra.mxu1 %v2901_v4 }
 0x331   :  { %679 = vmatprep.subr.mxu1 %v2946_v37 }
 0x332   :  { %680 = vmatpush1.msra.mxu1 %v2905_v7 }
 0x333   :  { %681 = vmatprep.subr.mxu1 %v2954_v39 }
 0x334   :  { %682 = vmatpush1.msra.mxu1 %v2909_v9 }
 0x335   :  { %886 = vmatprep.subr.mxu1 %v2934_v33 }
 0x3ed   :  { %v502_v48 = vpop.f32.mrf.mxu1 }
 0x3ee   :  { %v614_v49 = vrot.slane %v502_v48, 6 }
 0x3ef   :  { %v504_v51 = vpop.f32.mrf.mxu1 }
 0x3f0   :  { %v616_v52 = vadd.f32 %v614_v49, %v2925_v18  ;;  %v507_v53 = vadd.f32 %v504_v51, %v397_v46 }
 0x3f2   :  { %v2216_v54 = vmul.f32 -1.442695, %v616_v52  ;;  %v508_v55 = vadd.f32 %v2993_v50, %v507_v53 }
 0x3f4   :  { %2464 = vpow2.f32 %v2216_v54  ;;  %v2213_v56 = vmul.f32 -1.442695, %v508_v55 }
 0x3f6   :  { %2466 = vpow2.f32 %v2213_v56 }
 0x401   :  { %v2465_v57 = vpop.eup %2464 }
 0x402   :  { %v620_v58 = vadd.f32 1.0, %v2465_v57 }
 0x403   :  { %v2467_v59 = vpop.eup %2466 }
 0x404   :  { %2468 = vrcp.f32 %v620_v58  ;;  %v512_v60 = vadd.f32 1.0, %v2467_v59 }
 0x406   :  { %2470 = vrcp.f32 %v512_v60 }
 0x411   :  { %v2469_v61 = vpop.eup %2468 }
 0x412   :  { %v623_v62 = vmul.f32 2.0, %v2469_v61  ;;  %v628_v14 = vmul.f32 %v2469_v61, %v626_v13 }
 0x413   :  { %v2471_v63 = vpop.eup %2470 }
 0x414   :  { %v2217_v1 = vadd.f32 -1.0, %v623_v62  ;;  %v515_v2 = vmul.f32 2.0, %v2471_v63 }
 0x416   :  { %630 = vrot.lane.b32.xlu1 %v2217_v1, %s2786_s3  ;;  %v2214_v5 = vadd.f32 -1.0, %v515_v2 }
 0x418   :  { %523 = vrot.lane.b32.xlu0 %v2214_v5, %s2786_s3 }
 0x41c   :  { %518 = vrot.lane.b32.xlu0 %v254_v6, %s2772_s24 }
 0x488   :  { %v631_v8 = vpop.permute.xlu1 %630 }
 0x489   :  { %v633_v10 = vmul.f32 %v2469_v61, %v631_v8 }
 0x48a   :  { %v524_v11 = vpop.permute.xlu0 %523 }
 0x48b   :  { %635 = vrot.lane.b32.xlu1 %v633_v10, %s2772_s24  ;;  %v526_v12 = vmul.f32 %v2471_v63, %v524_v11 }
 0x48e   :  { %v519_v16 = vpop.permute.xlu0 %518 }
 0x48f   :  { %528 = vrot.lane.b32.xlu1 %v526_v12, %s2772_s24  ;;  %v521_v20 = vmul.f32 %v2471_v63, %v519_v16 }
 0x4fd   :  { %v636_v17 = vpop.permute.xlu1 %635 }
 0x4fe   :  { %v3003_v19 = vadd.f32 %v636_v17, %v628_v14 }
 0x500   :  { %2472 = vtanh.f32 %v3003_v19  ;;  %v837_v2 = vrot.slane %v3003_v19, 6 }
 0x501   :  { %v529_v21 = vpop.permute.xlu1 %528 }
 0x502   :  { %v3006_v22 = vadd.f32 %v529_v21, %v521_v20 }
 0x504   :  { %2474 = vtanh.f32 %v3006_v22 }
 0x50d   :  { %v2473_v23 = vpop.eup %2472 }
 0x50e   :  { %641 = vrot.lane.b32.xlu0 %v2473_v23, %s2786_s3 }
 0x511   :  { %v2475_v24 = vpop.eup %2474 }
 0x512   :  { %534 = vrot.lane.b32.xlu1 %v2475_v24, %s2786_s3 }
 0x580   :  { %v642_v25 = vpop.permute.xlu0 %641 }
 0x581   :  { %v644_v26 = vmul.f32 %v2469_v61, %v642_v25 }
 0x583   :  { %v646_v27 = vrot.slane %v644_v26, 2 }
 0x584   :  { %v535_v28 = vpop.permute.xlu1 %534 }
 0x585   :  { %v3011_v29 = vmul.f32 %v2471_v63, %v535_v28  ;;  %647 = vrot.lane.b32.xlu0 %v646_v27, %s2772_s24 }
 0x587   :  { %539 = vrot.lane.b32.xlu1 %v3011_v29, %s2772_s24 }
 0x5f7   :  { %v648_v30 = vpop.permute.xlu0 %647 }
 0x5f8   :  { %2218 = vmatmul.mubr.msk.f32.vlgmr.msra.gmra.mxu1 %vm148_vm1, %v648_v30 }
 0x5f9   :  { %v540_v31 = vpop.permute.xlu1 %539  ;;  %887 = vmatpush1.msra.mxu1 %v2898_v3  ;;  %926 = vmatprep.mubr.f32.mxu1 %v2784_v0 }
 0x5fa   :  { %2359 = vmatmul.mubr.msk.f32.vlgmr.msra.gmra.mxu0 %vm148_vm1, %v540_v31  ;;  %888 = vmatprep.subr.mxu1 %v2936_v34 }
 0x5fb   :  { %2362 = vmatpush3.msra.mxu0 %v2938_v35  ;;  %889 = vmatpush1.msra.mxu1 %v2901_v4 }
 0x5fc   :  { %2363 = vmatprep.subr.mxu0 %v2784_v0  ;;  %890 = vmatprep.subr.mxu1 %v2946_v37 }
 0x5fd   :  { %2364 = vmatpush3.msra.mxu0 %v2942_v36  ;;  %891 = vmatpush1.msra.mxu1 %v2905_v7 }
 0x5fe   :  { %2365 = vmatprep.subr.mxu0 %v2784_v0  ;;  %892 = vmatprep.subr.mxu1 %v2954_v39 }
 0x5ff   :  { %2366 = vmatpush3.msra.mxu0 %v2948_v38  ;;  %2369 = vmatprep.mubr.msk.f32.mxu0 %vm2785_vm0, %v2784_v0 }
 0x600   :  { %2367 = vmatprep.subr.mxu0 %v2784_v0  ;;  %893 = vmatpush1.msra.mxu1 %v2909_v9 }
 0x601   :  { %2368 = vmatpush3.msra.mxu0 %v2964_v41  ;;  %1097 = vmatprep.subr.mxu1 %v2934_v33 }
 0x602   :  { %2372 = vmatprep.subr.mxu0 %v2784_v0 }
 0x6b8   :  { %v717_v32 = vpop.f32.mrf.mxu1 }
 0x6b9   :  { %v825_v40 = vrot.slane %v717_v32, 4 }
 0x6ba   :  { %v609_v42 = vpop.f32.mrf.mxu0  ;;  %v719_v43 = vpop.f32.mrf.mxu1 }
 0x6bb   :  { %v827_v44 = vadd.f32 %v825_v40, %v2925_v18  ;;  %v722_v45 = vadd.f32 %v719_v43, %v609_v42 }
 0x6bc   :  { %v2360_v46 = vpop.f32.mrf.mxu0 }
 0x6bd   :  { %v2222_v47 = vmul.f32 -1.442695, %v827_v44  ;;  %v723_v48 = vadd.f32 %v2993_v50, %v722_v45 }
 0x6bf   :  { %2476 = vpow2.f32 %v2222_v47  ;;  %v2219_v49 = vmul.f32 -1.442695, %v723_v48 }
 0x6c1   :  { %2478 = vpow2.f32 %v2219_v49 }
 0x6cc   :  { %v2477_v51 = vpop.eup %2476 }
 0x6cd   :  { %v831_v52 = vadd.f32 1.0, %v2477_v51 }
 0x6ce   :  { %v2479_v53 = vpop.eup %2478 }
 0x6cf   :  { %2480 = vrcp.f32 %v831_v52  ;;  %v727_v54 = vadd.f32 1.0, %v2479_v53 }
 0x6d1   :  { %2482 = vrcp.f32 %v727_v54 }
 0x6dc   :  { %v2481_v55 = vpop.eup %2480 }
 0x6dd   :  { %v834_v56 = vmul.f32 2.0, %v2481_v55  ;;  %v839_v5 = vmul.f32 %v2481_v55, %v837_v2 }
 0x6de   :  { %v2483_v57 = vpop.eup %2482 }
 0x6df   :  { %v2223_v58 = vadd.f32 -1.0, %v834_v56  ;;  %v730_v59 = vmul.f32 2.0, %v2483_v57  ;;  %v732_v10 = vmul.f32 %v2483_v57, %v3006_v22 }
 0x6e1   :  { %841 = vrot.lane.b32.xlu0 %v2223_v58, %s2786_s3  ;;  %v2220_v60 = vadd.f32 -1.0, %v730_v59 }
 0x6e3   :  { %734 = vrot.lane.b32.xlu1 %v2220_v60, %s2786_s3 }
 0x753   :  { %v842_v61 = vpop.permute.xlu0 %841 }
 0x754   :  { %v844_v62 = vmul.f32 %v2481_v55, %v842_v61 }
 0x755   :  { %v735_v63 = vpop.permute.xlu1 %734 }
 0x756   :  { %v737_v1 = vmul.f32 %v2483_v57, %v735_v63  ;;  %846 = vrot.lane.b32.xlu0 %v844_v62, %s2772_s24 }
 0x758   :  { %739 = vrot.lane.b32.xlu1 %v737_v1, %s2772_s24 }
 0x7c8   :  { %v847_v6 = vpop.permute.xlu0 %846 }
 0x7c9   :  { %v3044_v8 = vadd.f32 %v847_v6, %v839_v5 }
 0x7ca   :  { %v740_v11 = vpop.permute.xlu1 %739 }
 0x7cb   :  { %2484 = vtanh.f32 %v3044_v8  ;;  %v3048_v12 = vadd.f32 %v740_v11, %v732_v10 }
 0x7cd   :  { %2486 = vtanh.f32 %v3048_v12 }
 0x7d8   :  { %v2485_v13 = vpop.eup %2484 }
 0x7d9   :  { %852 = vrot.lane.b32.xlu0 %v2485_v13, %s2786_s3 }
 0x7da   :  { %v2487_v14 = vpop.eup %2486 }
 0x7db   :  { %745 = vrot.lane.b32.xlu1 %v2487_v14, %s2786_s3 }
 0x84b   :  { %v853_v16 = vpop.permute.xlu0 %852 }
 0x84c   :  { %v855_v17 = vmul.f32 %v2481_v55, %v853_v16 }
 0x84d   :  { %v746_v19 = vpop.permute.xlu1 %745 }
 0x84e   :  { %v857_v20 = vrot.slane %v855_v17, 4  ;;  %v3053_v21 = vmul.f32 %v2483_v57, %v746_v19  ;;  %v1048_v57 = vrot.slane %v3044_v8, 6 }
 0x850   :  { %858 = vrot.lane.b32.xlu0 %v857_v20, %s2772_s24  ;;  %750 = vrot.lane.b32.xlu1 %v3053_v21, %s2772_s24  ;;  %v2033_v8 = vrot.slane %v3053_v21, 6 }
 0x852   :  { %v2046_v14 = vsel %vm2045_vm2, %v3011_v29, %v2033_v8 }
 0x8c2   :  { %v859_v22 = vpop.permute.xlu0 %858  ;;  %v751_v23 = vpop.permute.xlu1 %750 }
 0x8c3   :  { %2370 = vmatmul.mubr.msk.f32.vlgmr.msra.gmra.mxu0 %vm148_vm1, %v751_v23  ;;  %2224 = vmatmul.mubr.msk.f32.vlgmr.msra.gmra.mxu1 %vm148_vm1, %v859_v22 }
 0x8c4   :  { %2373 = vmatpush3.msra.mxu0 %v2938_v35  ;;  %1098 = vmatpush1.msra.mxu1 %v2898_v3 }
 0x8c5   :  { %2374 = vmatprep.subr.mxu0 %v2784_v0  ;;  %1099 = vmatprep.subr.mxu1 %v2936_v34 }
 0x8c6   :  { %2375 = vmatpush3.msra.mxu0 %v2942_v36  ;;  %1100 = vmatpush1.msra.mxu1 %v2901_v4 }
 0x8c7   :  { %2376 = vmatprep.subr.mxu0 %v2784_v0  ;;  %1101 = vmatprep.subr.mxu1 %v2946_v37 }
 0x8c8   :  { %2377 = vmatpush3.msra.mxu0 %v2948_v38  ;;  %1102 = vmatpush1.msra.mxu1 %v2905_v7 }
 0x8c9   :  { %2378 = vmatprep.subr.mxu0 %v2784_v0  ;;  %1103 = vmatprep.subr.mxu1 %v2954_v39 }
 0x8ca   :  { %1104 = vmatpush1.msra.mxu1 %v2909_v9  ;;  %1137 = vmatprep.mubr.f32.mxu1 %v2784_v0 }
 0x8cb   :  { %2379 = vmatpush3.msra.mxu0 %v2964_v41  ;;  %2380 = vmatprep.mubr.msk.f32.mxu0 %vm2785_vm0, %v2784_v0 }
 0x8cc   :  { %1304 = vmatprep.subr.mxu1 %v2934_v33  ;;  %2383 = vmatprep.subr.mxu0 %v2784_v0 }
 0x983   :  { %v820_v24 = vpop.f32.mrf.mxu0  ;;  %v928_v25 = vpop.f32.mrf.mxu1 }
 0x984   :  { %v1036_v26 = vrot.slane %v928_v25, 2 }
 0x985   :  { %v2371_v27 = vpop.f32.mrf.mxu0  ;;  %v930_v28 = vpop.f32.mrf.mxu1 }
 0x986   :  { %v1038_v30 = vadd.f32 %v1036_v26, %v2925_v18  ;;  %v933_v31 = vadd.f32 %v930_v28, %v820_v24 }
 0x988   :  { %v2228_v32 = vmul.f32 -1.442695, %v1038_v30  ;;  %v934_v40 = vadd.f32 %v2993_v50, %v933_v31 }
 0x98a   :  { %2488 = vpow2.f32 %v2228_v32  ;;  %v2225_v42 = vmul.f32 -1.442695, %v934_v40 }
 0x98c   :  { %2490 = vpow2.f32 %v2225_v42 }
 0x997   :  { %v2489_v43 = vpop.eup %2488 }
 0x998   :  { %v1042_v44 = vadd.f32 1.0, %v2489_v43 }
 0x999   :  { %v2491_v45 = vpop.eup %2490 }
 0x99a   :  { %2492 = vrcp.f32 %v1042_v44  ;;  %v938_v46 = vadd.f32 1.0, %v2491_v45 }
 0x99c   :  { %2494 = vrcp.f32 %v938_v46 }
 0x9a7   :  { %v2493_v47 = vpop.eup %2492 }
 0x9a8   :  { %v1045_v48 = vmul.f32 2.0, %v2493_v47  ;;  %v1050_v58 = vmul.f32 %v2493_v47, %v1048_v57 }
 0x9a9   :  { %v2495_v49 = vpop.eup %2494 }
 0x9aa   :  { %v2229_v51 = vadd.f32 -1.0, %v1045_v48  ;;  %v941_v52 = vmul.f32 2.0, %v2495_v49  ;;  %v943_v61 = vmul.f32 %v2495_v49, %v3048_v12 }
 0x9ac   :  { %1052 = vrot.lane.b32.xlu0 %v2229_v51, %s2786_s3  ;;  %v2226_v18 = vadd.f32 -1.0, %v941_v52 }
 0x9ae   :  { %945 = vrot.lane.b32.xlu1 %v2226_v18, %s2786_s3 }
 0xa1e   :  { %v1053_v53 = vpop.permute.xlu0 %1052 }
 0xa1f   :  { %v1055_v54 = vmul.f32 %v2493_v47, %v1053_v53 }
 0xa20   :  { %v946_v55 = vpop.permute.xlu1 %945 }
 0xa21   :  { %v948_v56 = vmul.f32 %v2495_v49, %v946_v55  ;;  %1057 = vrot.lane.b32.xlu0 %v1055_v54, %s2772_s24 }
 0xa23   :  { %950 = vrot.lane.b32.xlu1 %v948_v56, %s2772_s24 }
 0xa93   :  { %v1058_v59 = vpop.permute.xlu0 %1057 }
 0xa94   :  { %v3086_v60 = vadd.f32 %v1058_v59, %v1050_v58 }
 0xa95   :  { %v951_v62 = vpop.permute.xlu1 %950 }
 0xa96   :  { %2496 = vtanh.f32 %v3086_v60  ;;  %v3090_v63 = vadd.f32 %v951_v62, %v943_v61  ;;  %v1256_v52 = vrot.slane %v3086_v60, 6 }
 0xa98   :  { %2498 = vtanh.f32 %v3090_v63 }
 0xaa3   :  { %v2497_v1 = vpop.eup %2496 }
 0xaa4   :  { %1063 = vrot.lane.b32.xlu0 %v2497_v1, %s2786_s3 }
 0xaa5   :  { %v2499_v2 = vpop.eup %2498 }
 0xaa6   :  { %956 = vrot.lane.b32.xlu1 %v2499_v2, %s2786_s3 }
 0xb16   :  { %v1064_v5 = vpop.permute.xlu0 %1063 }
 0xb17   :  { %v1066_v6 = vmul.f32 %v2493_v47, %v1064_v5 }
 0xb18   :  { %v957_v10 = vpop.permute.xlu1 %956 }
 0xb19   :  { %v1068_v11 = vrot.slane %v1066_v6, 6  ;;  %v959_v12 = vmul.f32 %v2495_v49, %v957_v10 }
 0xb1b   :  { %v2035_v13 = vrot.slane %v959_v12, 4  ;;  %1069 = vrot.lane.b32.xlu0 %v1068_v11, %s2772_s24  ;;  %961 = vrot.lane.b32.xlu1 %v959_v12, %s2772_s24 }
 0xb1d   :  { %v3101_v16 = vsel %vm2047_vm3, %v2046_v14, %v2035_v13 }
 0xb8d   :  { %v1070_v17 = vpop.permute.xlu0 %1069  ;;  %v962_v19 = vpop.permute.xlu1 %961 }
 0xb8e   :  { %2381 = vmatmul.mubr.msk.f32.vlgmr.msra.gmra.mxu0 %vm148_vm1, %v962_v19  ;;  %2230 = vmatmul.mubr.msk.f32.vlgmr.msra.gmra.mxu1 %vm148_vm1, %v1070_v17 }
 0xb8f   :  { %1305 = vmatpush1.msra.mxu1 %v2898_v3  ;;  %2384 = vmatpush3.msra.mxu0 %v2938_v35 }
 0xb90   :  { %1306 = vmatprep.subr.mxu1 %v2936_v34  ;;  %2385 = vmatprep.subr.mxu0 %v2784_v0 }
 0xb91   :  { %1307 = vmatpush1.msra.mxu1 %v2901_v4  ;;  %1344 = vmatprep.mubr.f32.mxu1 %v2784_v0 }
 0xb92   :  { %1308 = vmatprep.subr.mxu1 %v2946_v37  ;;  %2386 = vmatpush3.msra.mxu0 %v2942_v36 }
 0xb93   :  { %1309 = vmatpush1.msra.mxu1 %v2905_v7  ;;  %2387 = vmatprep.subr.mxu0 %v2784_v0 }
 0xb94   :  { %1310 = vmatprep.subr.mxu1 %v2954_v39  ;;  %2388 = vmatpush3.msra.mxu0 %v2948_v38 }
 0xb95   :  { %1311 = vmatpush1.msra.mxu1 %v2909_v9  ;;  %2389 = vmatprep.subr.mxu0 %v2784_v0 }
 0xb96   :  { %2390 = vmatpush3.msra.mxu0 %v2964_v41  ;;  %2391 = vmatprep.mubr.msk.f32.mxu0 %vm2785_vm0, %v2784_v0 }
 0xb97   :  { %1515 = vmatprep.subr.mxu1 %v2934_v33  ;;  %2394 = vmatprep.subr.mxu0 %v2784_v0 }
 0xc4e   :  { %v1031_v29 = vpop.f32.mrf.mxu0  ;;  %v1139_v20 = vpop.f32.mrf.mxu1 }
 0xc4f   :  { %v1246_v21 = vadd.f32 %v1139_v20, %v2923_v15 }
 0xc50   :  { %v2382_v22 = vpop.f32.mrf.mxu0  ;;  %v1141_v23 = vpop.f32.mrf.mxu1 }
 0xc51   :  { %v2234_v24 = vmul.f32 -1.442695, %v1246_v21  ;;  %v1144_v25 = vadd.f32 %v1141_v23, %v1031_v29 }
 0xc53   :  { %2500 = vpow2.f32 %v2234_v24  ;;  %v1145_v26 = vadd.f32 %v2993_v50, %v1144_v25 }
 0xc55   :  { %v2231_v27 = vmul.f32 -1.442695, %v1145_v26 }
 0xc57   :  { %2502 = vpow2.f32 %v2231_v27 }
 0xc60   :  { %v2501_v28 = vpop.eup %2500 }
 0xc61   :  { %v1250_v30 = vadd.f32 1.0, %v2501_v28 }
 0xc63   :  { %2504 = vrcp.f32 %v1250_v30 }
 0xc64   :  { %v2503_v31 = vpop.eup %2502 }
 0xc65   :  { %v1149_v32 = vadd.f32 1.0, %v2503_v31 }
 0xc67   :  { %2506 = vrcp.f32 %v1149_v32 }
 0xc70   :  { %v2505_v40 = vpop.eup %2504 }
 0xc71   :  { %v1253_v42 = vmul.f32 2.0, %v2505_v40  ;;  %v1258_v18 = vmul.f32 %v2505_v40, %v1256_v52 }
 0xc73   :  { %v2235_v43 = vadd.f32 -1.0, %v1253_v42 }
 0xc74   :  { %v2507_v44 = vpop.eup %2506 }
 0xc75   :  { %1260 = vrot.lane.b32.xlu0 %v2235_v43, %s2786_s3  ;;  %v1152_v45 = vmul.f32 2.0, %v2507_v44  ;;  %v1154_v55 = vmul.f32 %v2507_v44, %v3090_v63 }
 0xc77   :  { %v2232_v46 = vadd.f32 -1.0, %v1152_v45 }
 0xc79   :  { %1156 = vrot.lane.b32.xlu1 %v2232_v46, %s2786_s3 }
 0xce7   :  { %v1261_v47 = vpop.permute.xlu0 %1260 }
 0xce8   :  { %v1263_v48 = vmul.f32 %v2505_v40, %v1261_v47 }
 0xcea   :  { %1265 = vrot.lane.b32.xlu0 %v1263_v48, %s2772_s24 }
 0xceb   :  { %v1157_v49 = vpop.permute.xlu1 %1156 }
 0xcec   :  { %v1159_v51 = vmul.f32 %v2507_v44, %v1157_v49 }
 0xcee   :  { %1161 = vrot.lane.b32.xlu1 %v1159_v51, %s2772_s24 }
 0xd5c   :  { %v1266_v53 = vpop.permute.xlu0 %1265 }
 0xd5d   :  { %v3131_v54 = vadd.f32 %v1266_v53, %v1258_v18 }
 0xd5f   :  { %2508 = vtanh.f32 %v3131_v54  ;;  %v1466_v43 = vrot.slane %v3131_v54, 6 }
 0xd60   :  { %v1162_v56 = vpop.permute.xlu1 %1161 }
 0xd61   :  { %v3135_v57 = vadd.f32 %v1162_v56, %v1154_v55 }
 0xd63   :  { %2510 = vtanh.f32 %v3135_v57 }
 0xd6c   :  { %v2509_v58 = vpop.eup %2508 }
 0xd6d   :  { %1271 = vrot.lane.b32.xlu0 %v2509_v58, %s2786_s3 }
 0xd70   :  { %v2511_v59 = vpop.eup %2510 }
 0xd71   :  { %1167 = vrot.lane.b32.xlu1 %v2511_v59, %s2786_s3 }
 0xddf   :  { %v1272_v60 = vpop.permute.xlu0 %1271 }
 0xde0   :  { %v1274_v61 = vmul.f32 %v2505_v40, %v1272_v60 }
 0xde2   :  { %1276 = vrot.lane.b32.xlu0 %v1274_v61, %s2772_s24 }
 0xde3   :  { %v1168_v62 = vpop.permute.xlu1 %1167 }
 0xde4   :  { %v1170_v1 = vmul.f32 %v2507_v44, %v1168_v62 }
 0xde6   :  { %v2037_v2 = vrot.slane %v1170_v1, 2  ;;  %1172 = vrot.lane.b32.xlu1 %v1170_v1, %s2772_s24 }
 0xde8   :  { %v3144_v63 = vsel %vm2049_vm4, %v3101_v16, %v2037_v2 }
 0xe54   :  { %v1277_v5 = vpop.permute.xlu0 %1276 }
 0xe55   :  { %2236 = vmatmul.mubr.msk.f32.vlgmr.msra.gmra.mxu1 %vm148_vm1, %v1277_v5 }
 0xe56   :  { %1516 = vmatpush1.msra.mxu1 %v2898_v3  ;;  %1555 = vmatprep.mubr.f32.mxu1 %v2784_v0 }
 0xe57   :  { %1517 = vmatprep.subr.mxu1 %v2936_v34 }
 0xe58   :  { %v1173_v6 = vpop.permute.xlu1 %1172  ;;  %1518 = vmatpush1.msra.mxu1 %v2901_v4 }
 0xe59   :  { %2392 = vmatmul.mubr.msk.f32.vlgmr.msra.gmra.mxu0 %vm148_vm1, %v1173_v6  ;;  %1519 = vmatprep.subr.mxu1 %v2946_v37 }
 0xe5a   :  { %2395 = vmatpush3.msra.mxu0 %v2938_v35  ;;  %1520 = vmatpush1.msra.mxu1 %v2905_v7 }
 0xe5b   :  { %2396 = vmatprep.subr.mxu0 %v2784_v0  ;;  %1521 = vmatprep.subr.mxu1 %v2954_v39 }
 0xe5c   :  { %2397 = vmatpush3.msra.mxu0 %v2942_v36  ;;  %1522 = vmatpush1.msra.mxu1 %v2909_v9 }
 0xe5d   :  { %2398 = vmatprep.subr.mxu0 %v2784_v0  ;;  %2402 = vmatprep.mubr.msk.f32.mxu0 %vm2785_vm0, %v2784_v0 }
 0xe5e   :  { %2399 = vmatpush3.msra.mxu0 %v2948_v38  ;;  %1726 = vmatprep.subr.mxu1 %v2934_v33 }
 0xe5f   :  { %2400 = vmatprep.subr.mxu0 %v2784_v0 }
 0xe60   :  { %2401 = vmatpush3.msra.mxu0 %v2964_v41 }
 0xe61   :  { %2405 = vmatprep.subr.mxu0 %v2784_v0 }
 0xf15   :  { %v1346_v8 = vpop.f32.mrf.mxu1 }
 0xf16   :  { %v1454_v10 = vrot.slane %v1346_v8, 6 }
 0xf17   :  { %v1348_v12 = vpop.f32.mrf.mxu1 }
 0xf18   :  { %v1456_v11 = vadd.f32 %v1454_v10, %v2923_v15 }
 0xf19   :  { %v1242_v13 = vpop.f32.mrf.mxu0 }
 0xf1a   :  { %v2240_v14 = vmul.f32 -1.442695, %v1456_v11  ;;  %v1351_v16 = vadd.f32 %v1348_v12, %v1242_v13 }
 0xf1b   :  { %v2393_v17 = vpop.f32.mrf.mxu0 }
 0xf1c   :  { %2512 = vpow2.f32 %v2240_v14  ;;  %v1352_v19 = vadd.f32 %v2993_v50, %v1351_v16 }
 0xf1e   :  { %v2237_v29 = vmul.f32 -1.442695, %v1352_v19 }
 0xf20   :  { %2514 = vpow2.f32 %v2237_v29 }
 0xf29   :  { %v2513_v20 = vpop.eup %2512 }
 0xf2a   :  { %v1460_v21 = vadd.f32 1.0, %v2513_v20 }
 0xf2c   :  { %2516 = vrcp.f32 %v1460_v21 }
 0xf2d   :  { %v2515_v22 = vpop.eup %2514 }
 0xf2e   :  { %v1356_v23 = vadd.f32 1.0, %v2515_v22 }
 0xf30   :  { %2518 = vrcp.f32 %v1356_v23 }
 0xf39   :  { %v2517_v24 = vpop.eup %2516 }
 0xf3a   :  { %v1463_v25 = vmul.f32 2.0, %v2517_v24  ;;  %v1468_v44 = vmul.f32 %v2517_v24, %v1466_v43 }
 0xf3c   :  { %v2241_v26 = vadd.f32 -1.0, %v1463_v25 }
 0xf3d   :  { %v2519_v27 = vpop.eup %2518 }
 0xf3e   :  { %1470 = vrot.lane.b32.xlu0 %v2241_v26, %s2786_s3  ;;  %v1359_v28 = vmul.f32 2.0, %v2519_v27  ;;  %v1361_v47 = vmul.f32 %v2519_v27, %v3135_v57 }
 0xf40   :  { %v2238_v30 = vadd.f32 -1.0, %v1359_v28 }
 0xf42   :  { %1363 = vrot.lane.b32.xlu1 %v2238_v30, %s2786_s3 }
 0xfb0   :  { %v1471_v31 = vpop.permute.xlu0 %1470 }
 0xfb1   :  { %v1473_v32 = vmul.f32 %v2517_v24, %v1471_v31 }
 0xfb3   :  { %1475 = vrot.lane.b32.xlu0 %v1473_v32, %s2772_s24 }
 0xfb4   :  { %v1364_v40 = vpop.permute.xlu1 %1363 }
 0xfb5   :  { %v1366_v42 = vmul.f32 %v2519_v27, %v1364_v40 }
 0xfb7   :  { %1368 = vrot.lane.b32.xlu1 %v1366_v42, %s2772_s24 }
0x1025   :  { %v1476_v45 = vpop.permute.xlu0 %1475 }
0x1026   :  { %v3174_v46 = vadd.f32 %v1476_v45, %v1468_v44 }
0x1028   :  { %2520 = vtanh.f32 %v3174_v46  ;;  %v1677_v21 = vrot.slane %v3174_v46, 6  ;;  %v2554_v46 = vld [vmem:[#allocation10 + $0x30] sm:$0xff] }
0x1029   :  { %v1369_v48 = vpop.permute.xlu1 %1368 }
0x102a   :  { %v3178_v49 = vadd.f32 %v1369_v48, %v1361_v47  ;;  %v2555_v47 = vld [vmem:[#allocation10 + $0x20] sm:$0xff]  ;;  %v2556_v48 = vld [vmem:[#allocation10 + $0x10] sm:$0xff] }
0x102c   :  { %2522 = vtanh.f32 %v3178_v49 }
0x1035   :  { %v2521_v51 = vpop.eup %2520 }
0x1036   :  { %1481 = vrot.lane.b32.xlu0 %v2521_v51, %s2786_s3 }
0x1039   :  { %v2523_v52 = vpop.eup %2522 }
0x103a   :  { %1374 = vrot.lane.b32.xlu1 %v2523_v52, %s2786_s3 }
0x10a8   :  { %v1482_v18 = vpop.permute.xlu0 %1481 }
0x10a9   :  { %v1484_v53 = vmul.f32 %v2517_v24, %v1482_v18 }
0x10ab   :  { %v1486_v54 = vrot.slane %v1484_v53, 2 }
0x10ac   :  { %v1375_v55 = vpop.permute.xlu1 %1374 }
0x10ad   :  { %v3183_v56 = vmul.f32 %v2519_v27, %v1375_v55  ;;  %1487 = vrot.lane.b32.xlu0 %v1486_v54, %s2772_s24 }
0x10af   :  { %1379 = vrot.lane.b32.xlu1 %v3183_v56, %s2772_s24 }
0x111f   :  { %v1488_v57 = vpop.permute.xlu0 %1487 }
0x1120   :  { %2242 = vmatmul.mubr.msk.f32.vlgmr.msra.gmra.mxu1 %vm148_vm1, %v1488_v57 }
0x1121   :  { %v1380_v58 = vpop.permute.xlu1 %1379  ;;  %1727 = vmatpush1.msra.mxu1 %v2898_v3  ;;  %1766 = vmatprep.mubr.f32.mxu1 %v2784_v0 }
0x1122   :  { %2403 = vmatmul.mubr.msk.f32.vlgmr.msra.gmra.mxu0 %vm148_vm1, %v1380_v58  ;;  %1728 = vmatprep.subr.mxu1 %v2936_v34 }
0x1123   :  { %2406 = vmatpush3.msra.mxu0 %v2938_v35  ;;  %1729 = vmatpush1.msra.mxu1 %v2901_v4 }
0x1124   :  { %2407 = vmatprep.subr.mxu0 %v2784_v0  ;;  %1730 = vmatprep.subr.mxu1 %v2946_v37 }
0x1125   :  { %2408 = vmatpush3.msra.mxu0 %v2942_v36  ;;  %1731 = vmatpush1.msra.mxu1 %v2905_v7 }
0x1126   :  { %2409 = vmatprep.subr.mxu0 %v2784_v0  ;;  %1732 = vmatprep.subr.mxu1 %v2954_v39 }
0x1127   :  { %2410 = vmatpush3.msra.mxu0 %v2948_v38  ;;  %1733 = vmatpush1.msra.mxu1 %v2909_v9 }
0x1128   :  { %2411 = vmatprep.subr.mxu0 %v2784_v0  ;;  %2413 = vmatprep.mubr.msk.f32.mxu0 %vm2785_vm0, %v2784_v0 }
0x1129   :  { %2412 = vmatpush3.msra.mxu0 %v2964_v41  ;;  %1937 = vmatprep.subr.mxu1 %v2934_v33 }
0x112a   :  { %2416 = vmatprep.subr.mxu0 %v2784_v0 }
0x11e0   :  { %v1557_v3 = vpop.f32.mrf.mxu1 }
0x11e1   :  { %v1665_v4 = vrot.slane %v1557_v3, 4 }
0x11e2   :  { %v1449_v7 = vpop.f32.mrf.mxu0  ;;  %v1559_v59 = vpop.f32.mrf.mxu1 }
0x11e3   :  { %v1667_v60 = vadd.f32 %v1665_v4, %v2923_v15  ;;  %v1562_v61 = vadd.f32 %v1559_v59, %v1449_v7 }
0x11e4   :  { %v2404_v62 = vpop.f32.mrf.mxu0 }
0x11e5   :  { %v2246_v9 = vmul.f32 -1.442695, %v1667_v60  ;;  %v1563_v1 = vadd.f32 %v2993_v50, %v1562_v61 }
0x11e7   :  { %2524 = vpow2.f32 %v2246_v9  ;;  %v2243_v2 = vmul.f32 -1.442695, %v1563_v1 }
0x11e9   :  { %2526 = vpow2.f32 %v2243_v2 }
0x11f4   :  { %v2525_v5 = vpop.eup %2524 }
0x11f5   :  { %v1671_v6 = vadd.f32 1.0, %v2525_v5 }
0x11f6   :  { %v2527_v8 = vpop.eup %2526 }
0x11f7   :  { %2528 = vrcp.f32 %v1671_v6  ;;  %v1567_v33 = vadd.f32 1.0, %v2527_v8 }
0x11f9   :  { %2530 = vrcp.f32 %v1567_v33 }
0x1204   :  { %v2529_v10 = vpop.eup %2528 }
0x1205   :  { %v1674_v11 = vmul.f32 2.0, %v2529_v10  ;;  %v1679_v22 = vmul.f32 %v2529_v10, %v1677_v21 }
0x1206   :  { %v2531_v12 = vpop.eup %2530 }
0x1207   :  { %v2247_v13 = vadd.f32 -1.0, %v1674_v11  ;;  %v1570_v14 = vmul.f32 2.0, %v2531_v12  ;;  %v1572_v25 = vmul.f32 %v2531_v12, %v3178_v49 }
0x1209   :  { %1681 = vrot.lane.b32.xlu0 %v2247_v13, %s2786_s3  ;;  %v2244_v16 = vadd.f32 -1.0, %v1570_v14 }
0x120b   :  { %1574 = vrot.lane.b32.xlu1 %v2244_v16, %s2786_s3 }
0x127b   :  { %v1682_v17 = vpop.permute.xlu0 %1681 }
0x127c   :  { %v1684_v19 = vmul.f32 %v2529_v10, %v1682_v17 }
0x127d   :  { %v1575_v29 = vpop.permute.xlu1 %1574 }
0x127e   :  { %v1577_v20 = vmul.f32 %v2531_v12, %v1575_v29  ;;  %1686 = vrot.lane.b32.xlu0 %v1684_v19, %s2772_s24 }
0x1280   :  { %1579 = vrot.lane.b32.xlu1 %v1577_v20, %s2772_s24 }
0x12f0   :  { %v1687_v23 = vpop.permute.xlu0 %1686 }
0x12f1   :  { %v3216_v24 = vadd.f32 %v1687_v23, %v1679_v22 }
0x12f2   :  { %v1580_v26 = vpop.permute.xlu1 %1579 }
0x12f3   :  { %2532 = vtanh.f32 %v3216_v24  ;;  %v3220_v27 = vadd.f32 %v1580_v26, %v1572_v25  ;;  %v1888_v62 = vrot.slane %v3216_v24, 6 }
0x12f5   :  { %2534 = vtanh.f32 %v3220_v27 }
0x1300   :  { %v2533_v28 = vpop.eup %2532 }
0x1301   :  { %1692 = vrot.lane.b32.xlu0 %v2533_v28, %s2786_s3  ;;  %v2558_v28 = vld [vmem:[%s3307_s7] ss:$0 sm:$0xff]  ;;  %s2787_s7 = smov 96  }
0x1302   :  { %v2535_v30 = vpop.eup %2534 }
0x1303   :  { %1585 = vrot.lane.b32.xlu1 %v2535_v30, %s2786_s3 }
0x1373   :  { %v1693_v31 = vpop.permute.xlu0 %1692 }
0x1374   :  { %v1695_v32 = vmul.f32 %v2529_v10, %v1693_v31 }
0x1375   :  { %v1586_v40 = vpop.permute.xlu1 %1585 }
0x1376   :  { %v1697_v42 = vrot.slane %v1695_v32, 4  ;;  %v3225_v43 = vmul.f32 %v2531_v12, %v1586_v40 }
0x1378   :  { %1698 = vrot.lane.b32.xlu0 %v1697_v42, %s2772_s24  ;;  %1590 = vrot.lane.b32.xlu1 %v3225_v43, %s2772_s24  ;;  %v2039_v13 = vrot.slane %v3225_v43, 6 }
0x137a   :  { %v2051_v29 = vsel %vm2045_vm2, %v3183_v56, %v2039_v13 }
0x13ea   :  { %v1699_v44 = vpop.permute.xlu0 %1698  ;;  %v1591_v45 = vpop.permute.xlu1 %1590 }
0x13eb   :  { %2414 = vmatmul.mubr.msk.f32.vlgmr.msra.gmra.mxu0 %vm148_vm1, %v1591_v45  ;;  %2248 = vmatmul.mubr.msk.f32.vlgmr.msra.gmra.mxu1 %vm148_vm1, %v1699_v44 }
0x13ec   :  { %2417 = vmatpush3.msra.mxu0 %v2938_v35  ;;  %1938 = vmatpush1.msra.mxu1 %v2554_v46  ;;  %v2557_v35 = vld [vmem:[#allocation10] sm:$0xff] }
0x13ed   :  { %2418 = vmatprep.subr.mxu0 %v2784_v0  ;;  %1939 = vmatprep.subr.mxu1 %v2936_v34 }
0x13ee   :  { %2419 = vmatpush3.msra.mxu0 %v2942_v36  ;;  %1940 = vmatpush1.msra.mxu1 %v2555_v47 }
0x13ef   :  { %2420 = vmatprep.subr.mxu0 %v2784_v0  ;;  %1941 = vmatprep.subr.mxu1 %v2946_v37 }
0x13f0   :  { %2421 = vmatpush3.msra.mxu0 %v2948_v38  ;;  %1942 = vmatpush1.msra.mxu1 %v2556_v48 }
0x13f1   :  { %2422 = vmatprep.subr.mxu0 %v2784_v0  ;;  %1943 = vmatprep.subr.mxu1 %v2954_v39 }
0x13f2   :  { %1944 = vmatpush1.msra.mxu1 %v2557_v35  ;;  %1977 = vmatprep.mubr.f32.mxu1 %v2784_v0 }
0x13f3   :  { %2423 = vmatpush3.msra.mxu0 %v2964_v41  ;;  %2424 = vmatprep.mubr.msk.f32.mxu0 %vm2785_vm0, %v2784_v0 }
0x14ab   :  { %v1660_v34 = vpop.f32.mrf.mxu0  ;;  %v1768_v36 = vpop.f32.mrf.mxu1 }
0x14ac   :  { %v1876_v37 = vrot.slane %v1768_v36, 2 }
0x14ad   :  { %v2415_v49 = vpop.f32.mrf.mxu0  ;;  %v1770_v38 = vpop.f32.mrf.mxu1 }
0x14ae   :  { %v1878_v51 = vadd.f32 %v1876_v37, %v2923_v15  ;;  %v1773_v52 = vadd.f32 %v1770_v38, %v1660_v34  ;;  %v2056_v49 = vld [vmem:[#allocation13 + $0x10] sm:$0xff]  ;;  %v2055_v38 = vld [vmem:[#allocation13 + $0x8] sm:$0xff] }
0x14b0   :  { %v2252_v18 = vmul.f32 -1.442695, %v1878_v51  ;;  %v1774_v39 = vadd.f32 %v2993_v50, %v1773_v52  ;;  %v2054_v51 = vld [vmem:[#allocation13] sm:$0xff] }
0x14b2   :  { %2536 = vpow2.f32 %v2252_v18  ;;  %v2249_v53 = vmul.f32 -1.442695, %v1774_v39 }
0x14b4   :  { %2538 = vpow2.f32 %v2249_v53 }
0x14bf   :  { %v2537_v54 = vpop.eup %2536 }
0x14c0   :  { %v1882_v55 = vadd.f32 1.0, %v2537_v54 }
0x14c1   :  { %v2539_v41 = vpop.eup %2538 }
0x14c2   :  { %2540 = vrcp.f32 %v1882_v55  ;;  %v1778_v57 = vadd.f32 1.0, %v2539_v41 }
0x14c4   :  { %2542 = vrcp.f32 %v1778_v57 }
0x14cf   :  { %v2541_v0 = vpop.eup %2540 }
0x14d0   :  { %v1885_v58 = vmul.f32 2.0, %v2541_v0  ;;  %v1890_v9 = vmul.f32 %v2541_v0, %v1888_v62 }
0x14d1   :  { %v2543_v3 = vpop.eup %2542 }
0x14d2   :  { %v2253_v4 = vadd.f32 -1.0, %v1885_v58  ;;  %v1781_v7 = vmul.f32 2.0, %v2543_v3  ;;  %v1783_v5 = vmul.f32 %v2543_v3, %v3220_v27 }
0x14d4   :  { %1892 = vrot.lane.b32.xlu0 %v2253_v4, %s2786_s3  ;;  %v2250_v15 = vadd.f32 -1.0, %v1781_v7 }
0x14d6   :  { %1785 = vrot.lane.b32.xlu1 %v2250_v15, %s2786_s3 }
0x1546   :  { %v1893_v50 = vpop.permute.xlu0 %1892 }
0x1547   :  { %v1895_v59 = vmul.f32 %v2541_v0, %v1893_v50 }
0x1548   :  { %v1786_v60 = vpop.permute.xlu1 %1785 }
0x1549   :  { %v1788_v61 = vmul.f32 %v2543_v3, %v1786_v60  ;;  %1897 = vrot.lane.b32.xlu0 %v1895_v59, %s2772_s24 }
0x154b   :  { %1790 = vrot.lane.b32.xlu1 %v1788_v61, %s2772_s24 }
0x15bb   :  { %v1898_v1 = vpop.permute.xlu0 %1897 }
0x15bc   :  { %v1900_v2 = vadd.f32 %v1898_v1, %v1890_v9 }
0x15bd   :  { %v1791_v6 = vpop.permute.xlu1 %1790 }
0x15be   :  { %2544 = vtanh.f32 %v1900_v2  ;;  %v1793_v8 = vadd.f32 %v1791_v6, %v1783_v5 }
0x15c0   :  { %2546 = vtanh.f32 %v1793_v8 }
0x15cb   :  { %v2545_v33 = vpop.eup %2544 }
0x15cc   :  { %1903 = vrot.lane.b32.xlu0 %v2545_v33, %s2786_s3 }
0x15cd   :  { %v2547_v10 = vpop.eup %2546 }
0x15ce   :  { %1796 = vrot.lane.b32.xlu1 %v2547_v10, %s2786_s3 }
0x163e   :  { %v1904_v11 = vpop.permute.xlu0 %1903 }
0x163f   :  { %v1906_v12 = vmul.f32 %v2541_v0, %v1904_v11 }
0x1640   :  { %v1797_v14 = vpop.permute.xlu1 %1796 }
0x1641   :  { %v1799_v16 = vmul.f32 %v2543_v3, %v1797_v14  ;;  %v1908_v17 = vrot.slane %v1906_v12, 6 }
0x1643   :  { %v2041_v19 = vrot.slane %v1799_v16, 4  ;;  %1909 = vrot.lane.b32.xlu0 %v1908_v17, %s2772_s24  ;;  %1801 = vrot.lane.b32.xlu1 %v1799_v16, %s2772_s24 }
0x1645   :  { %v2052_v20 = vsel %vm2047_vm3, %v2051_v29, %v2041_v19 }
0x16b5   :  { %v1910_v21 = vpop.permute.xlu0 %1909  ;;  %v1802_v22 = vpop.permute.xlu1 %1801 }
0x16b6   :  { %2425 = vmatmul.mubr.msk.f32.vlgmr.msra.gmra.mxu0 %vm148_vm1, %v1802_v22  ;;  %2254 = vmatmul.mubr.msk.f32.vlgmr.msra.gmra.mxu1 %vm148_vm1, %v1910_v21 }
0x1776   :  { %v1871_v23 = vpop.f32.mrf.mxu0  ;;  %v1979_v24 = vpop.f32.mrf.mxu1 }
0x1778   :  { %v2426_v25 = vpop.f32.mrf.mxu0  ;;  %v1980_v26 = vpop.f32.mrf.mxu1 }
0x1779   :  { %v1983_v27 = vadd.f32 %v1980_v26, %v1871_v23 }
0x177b   :  { %v1984_v30 = vadd.f32 %v2558_v28, %v1983_v27 }
0x177d   :  { %v2255_v31 = vmul.f32 -1.442695, %v1984_v30 }
0x177f   :  { %2548 = vpow2.f32 %v2255_v31 }
0x178c   :  { %v2549_v56 = vpop.eup %2548 }
0x178d   :  { %v1988_v32 = vadd.f32 1.0, %v2549_v56 }
0x178f   :  { %2550 = vrcp.f32 %v1988_v32 }
0x179c   :  { %v2551_v40 = vpop.eup %2550 }
0x179d   :  { %v1991_v42 = vmul.f32 2.0, %v2551_v40  ;;  %v1993_v46 = vmul.f32 %v2551_v40, %v1793_v8 }
0x179f   :  { %v2256_v43 = vadd.f32 -1.0, %v1991_v42 }
0x17a1   :  { %1995 = vrot.lane.b32.xlu0 %v2256_v43, %s2786_s3 }
0x1813   :  { %v1996_v44 = vpop.permute.xlu0 %1995 }
0x1814   :  { %v1998_v45 = vmul.f32 %v2551_v40, %v1996_v44 }
0x1816   :  { %2000 = vrot.lane.b32.xlu1 %v1998_v45, %s2772_s24 }
0x181a   :  { %2067 = vrot.lane.b32.xlu1 %v3144_v63, %s2772_s24  ;;  %v2057_v63 = vld [vmem:[#allocation13 + $0x18] sm:$0xff] }
0x181b   :  { %2427 = vmatprep.subr.mxu0 %v2057_v63 }
0x181c   :  { %2428 = vmatpush3.msra.mxu0 %v2057_v63 }
0x181d   :  { %2429 = vmatprep.subr.mxu0 %v2056_v49 }
0x181e   :  { %2010 = vrot.lane.b32.xlu1 %v1906_v12, %s2772_s24  ;;  %2430 = vmatpush3.msra.mxu0 %v2056_v49 }
0x181f   :  { %2431 = vmatprep.subr.mxu0 %v2055_v38 }
0x1820   :  { %2432 = vmatpush3.msra.mxu0 %v2055_v38 }
0x1821   :  { %2433 = vmatprep.subr.mxu0 %v2054_v51 }
0x1822   :  { %2023 = vrot.lane.b32.xlu1 %v1900_v2, %s2787_s7  ;;  %2434 = vmatpush3.msra.mxu0 %v2054_v51 }
0x1888   :  { %v2001_v47 = vpop.permute.xlu1 %2000 }
0x1889   :  { %v2003_v48 = vadd.f32 %v2001_v47, %v1993_v46 }
0x188b   :  { %2552 = vtanh.f32 %v2003_v48 }
0x188c   :  { %v2068_v35 = vpop.permute.xlu1 %2067 }
0x188d   :  { %2435 = vmatprep.mubr.msk.f32.mxu0 %vm148_vm1, %v2068_v35 }
0x1890   :  { %v2011_v34 = vpop.permute.xlu1 %2010 }
0x1891   :  { %2014 = vst.msk [vmem:[#allocation15 - $0x6] sm:$0xc0] %vm2013_vm5, %v2011_v34 }
0x1894   :  { %v2024_v36 = vpop.permute.xlu1 %2023 }
0x1895   :  { %2026 = vst.msk [vmem:[#allocation17 - $0x6] sm:$0xc0] %vm2013_vm5, %v2024_v36 }
0x1898   :  { %v2553_v37 = vpop.eup %2552 }
0x1899   :  { %2006 = vrot.lane.b32.xlu0 %v2553_v37, %s2786_s3 }
0x190b   :  { %v2007_v52 = vpop.permute.xlu0 %2006 }
0x190c   :  { %v2009_v18 = vmul.f32 %v2551_v40, %v2007_v52 }
0x190e   :  { %v2043_v39 = vrot.slane %v2009_v18, 2 }
0x1910   :  { %v2053_v53 = vsel %vm2049_vm4, %v2052_v20, %v2043_v39 }
0x1911   :  { %2069 = vrot.lane.b32.xlu0 %v2053_v53, %s2772_s24 }
0x1915   :  { %2016 = vrot.lane.b32.xlu0 %v2009_v18, %s2772_s24 }
0x1919   :  { %2028 = vrot.lane.b32.xlu0 %v2003_v48, %s2787_s7 }
0x1983   :  { %v2070_v54 = vpop.permute.xlu0 %2069 }
0x1984   :  { %2436 = vmatmul.mubr.msk.f32.vlgmr.msra.gmra.mxu0 %vm148_vm1, %v2070_v54 }
0x1987   :  { %v2017_v55 = vpop.permute.xlu0 %2016 }
0x1988   :  { %2021 = vst.msk [vmem:[#allocation15 + $0x2] sm:$0x3] %vm2020_vm6, %v2017_v55 }
0x198b   :  { %v2029_v41 = vpop.permute.xlu0 %2028 }
0x198c   :  { %2032 = vst.msk [vmem:[#allocation17 + $0x2] sm:$0x3] %vm2020_vm6, %v2029_v41 }
0x198d   :  { %2710 = shalt.err (!%p2707_p11)
}
0x198e   :  { %2176 = dma.vmem_to_hbm [thread:$0]  %s2171_s29, 64, %s3311_s11, [#allocation16], %s2772_s24, %s2772_s24, %s2773_s25  }
0x198f   :  { %s2789_s17 = smov [#allocation17]  }
0x1990   :  { %s2182_s0 = sshll.u32 %s2789_s17, 4  ;;  %s2183_s0 = int_to_ptr.vmem [resolvable:$true] %s2182_s0 }
0x1991   :  { %s2719_s18 = scalar_lea.vmem %s2183_s0, 64  ;;  %p2724_p13 = scmp.lt.s32.totalorder %s2183_s0, %s2183_s0 }
0x1992   :  { %p2720_p12 = scmp.ne.s32.totalorder %s2183_s0, %s2719_s18  ;;  %p2725_p0 = scmp.lt.s32.totalorder %s2719_s18, %s2719_s18 }
0x1994   :  { %p2726_p1 = por %p2725_p0, %p2724_p13 }
0x1996   :  { %p2727_p2 = pnand %p2726_p1, %p2720_p12 }
0x1998   :  { %2730 = shalt.err (!%p2727_p2)
}
0x1999   :  { %2188 = dma.vmem_to_hbm [thread:$0]  %s2183_s0, 64, %s3312_s12, [#allocation16], %s2772_s24, %s2772_s24, %s2773_s25   ;;  %vm2150_vm7 = vcmask 523264  }
0x199a   :  { %v2257_v57 = vld [vmem:[%s3309_s9] ss:$0 sm:$0xff]  ;;  %s2790_s11 = smov [#allocation14]  }
0x199b   :  { %s2158_s2 = sshll.u32 %s2790_s11, 4  ;;  %s2159_s2 = int_to_ptr.vmem [resolvable:$true] %s2158_s2 }
0x199c   :  { %s2739_s22 = scalar_lea.vmem %s2159_s2, 256  ;;  %p2744_p4 = scmp.lt.s32.totalorder %s2159_s2, %s2159_s2 }
0x199d   :  { %p2740_p3 = scmp.ne.s32.totalorder %s2159_s2, %s2739_s22  ;;  %p2745_p5 = scmp.lt.s32.totalorder %s2739_s22, %s2739_s22 }
0x199f   :  { %p2746_p6 = por %p2745_p5, %p2744_p4 }
0x19a1   :  { %p2747_p7 = pnand %p2746_p6, %p2740_p3 }
0x1a44   :  { %v2437_v0 = vpop.f32.mrf.mxu0 }
0x1a45   :  { %v2147_v58 = vadd.f32 %v2437_v0, %v2257_v57 }
0x1a46   :  { %v2141_v3 = vpop.f32.mrf.mxu0 }
0x1a47   :  { %v2142_v4 = vadd.f32 %v2257_v57, %v2141_v3  ;;  %2152 = vst.msk [vmem:[#allocation14 + $0x8] sm:$0xff] %vm2150_vm7, %v2147_v58 }
0x1a49   :  { %2151 = vst.msk [vmem:[#allocation14] sm:$0xff] %vm2150_vm7, %v2142_v4 }
0x1a4a   :  { %2750 = shalt.err (!%p2747_p7)
}
0x1a4b   :  { %2164 = dma.vmem_to_hbm [thread:$0]  %s2159_s2, 256, %s3310_s10, [#allocation4], %s2776_s15, %s2776_s15, %s2777_s16  }
0x1a4c   :  { %2767 = dma.done.wait [#allocation4], 256  }
0x1a4d   :  { %2768 = vsyncadd [#allocation4], 4294967040 }
0x1a4e   :  { %2769 = dma.done.wait [#allocation16], 128  }
0x1a4f   :  { %2770 = vsyncadd [#allocation16], 4294967168 }
0x1a50   :  { %2198 = vsyncpa [#allocation3], 1 }
0x1a51   :  { %2199 = vsyncpa [#allocation6], 1 }
0x1a52   :  { %2200 = vsyncpa [#allocation9], 1 }
0x1a53   :  { %2201 = vsyncpa [#allocation12], 1 }
0x1a54   :  { %2202 = vsyncpa [#allocation4], 1 }
0x1a55   :  { %2203 = vsyncpa [#allocation16], 1 }

</bundles_post_ra>
